<compile_context>
chip_gen: v7x
topology: tpu7x:2x2x1
jax: 0.10.0
libtpu: 0.0.40
codegen_flags: <defaults>
</compile_context>

<pallas_src>
import jax
import jax.numpy as jnp
from jax import lax
from jax.experimental import pallas as pl
from jax.experimental.pallas import tpu as pltpu

# ------------------------- model config (synthetic, small) -------------------------
VOCAB = 64        # word vocab size
TYPE_VOCAB = 2    # token type vocab size
MAX_POS = 16      # max position embeddings
HIDDEN = 128      # hidden size (lane-friendly)
LN_EPS = 1e-12    # BERT LayerNorm eps
TOK = 256         # tokens per grid step (multiple of 8 sublanes and 128 lanes)


# ------------------------- fused kernel -------------------------
def emb_kernel(ids_ref, tt_ref, pos_ref, mask_ref,        # token-tile inputs
               w_ref, p_ref, t_ref, gamma_ref, beta_ref,  # VMEM-resident tables/params
               out_ref, mask_out_ref):                    # outputs: (TOK,H) emb, (1,TOK) mask
    ids = ids_ref[...]        # (TOK, 1) int32
    tt = tt_ref[...]          # (TOK, 1) int32
    pos = pos_ref[...]        # (TOK, 1) int32
    tok = ids.shape[0]

    # Word embedding gather as a one-hot matmul on the MXU.
    vocab_iota = lax.broadcasted_iota(jnp.int32, (tok, VOCAB), 1)
    oh_w = (ids == vocab_iota).astype(jnp.float32)                    # (TOK, VOCAB)
    x = jnp.dot(oh_w, w_ref[...], preferred_element_type=jnp.float32)  # (TOK, H)

    # Position embedding gather, same trick (table has MAX_POS rows).
    pos_iota = lax.broadcasted_iota(jnp.int32, (tok, MAX_POS), 1)
    oh_p = (pos == pos_iota).astype(jnp.float32)                      # (TOK, MAX_POS)
    x = x + jnp.dot(oh_p, p_ref[...], preferred_element_type=jnp.float32)

    # Token-type embedding: 2-row table -> where-select on the VPU.
    tvals = t_ref[...]                                                # (2, H)
    x = x + jnp.where(tt == 0, tvals[0:1, :], tvals[1:2, :])          # (TOK, H)

    # LayerNorm over the hidden dim (f32 accumulation).
    mean = jnp.mean(x, axis=-1, keepdims=True)
    var = jnp.mean((x - mean) * (x - mean), axis=-1, keepdims=True)
    y = (x - mean) * lax.rsqrt(var + LN_EPS)
    out_ref[...] = y * gamma_ref[...] + beta_ref[...]

    # Extended attention mask: (1 - m) * -10000, fused as a second output.
    mask_out_ref[...] = (1.0 - mask_ref[...].astype(jnp.float32)) * -10000.0


# ------------------------- wrapper -------------------------
def emb_wrapper_forward(input_ids, attention_mask, token_type_ids, params, tok=TOK):
    """input_ids / attention_mask / token_type_ids: (B, S) int32.
    Returns (emb (B,S,H) f32, extended_attention_mask (B,S) f32)."""
    word_emb, pos_emb, type_emb, gamma, beta = params
    B, S = input_ids.shape
    N = B * S
    G = pl.cdiv(N, tok)
    N_pad = G * tok
    pad = N_pad - N

    ids_flat = input_ids.reshape(N).astype(jnp.int32)
    tt_flat = token_type_ids.reshape(N).astype(jnp.int32)
    pos_flat = jnp.tile(jnp.arange(S, dtype=jnp.int32), (B,))
    mask_flat = attention_mask.reshape(N).astype(jnp.int32)

    if pad:
        zpad = jnp.zeros((pad,), jnp.int32)
        ids_flat = jnp.concatenate([ids_flat, zpad])
        tt_flat = jnp.concatenate([tt_flat, zpad])
        pos_flat = jnp.concatenate([pos_flat, zpad])
        mask_flat = jnp.concatenate([mask_flat, zpad])

    ids_2d = ids_flat.reshape(N_pad, 1)     # sublane-major per-token scalars
    tt_2d = tt_flat.reshape(N_pad, 1)
    pos_2d = pos_flat.reshape(N_pad, 1)
    mask_2d = mask_flat.reshape(G, tok)     # lane-dense mask tiles

    emb_pad, mask_pad = pl.pallas_call(
        emb_kernel,
        out_shape=(jax.ShapeDtypeStruct((N_pad, HIDDEN), jnp.float32),
                   jax.ShapeDtypeStruct((G, tok), jnp.float32)),
        grid=(G,),
        in_specs=[
            pl.BlockSpec((tok, 1), lambda i: (i, 0)),                 # input_ids tile
            pl.BlockSpec((tok, 1), lambda i: (i, 0)),                 # token_type tile
            pl.BlockSpec((tok, 1), lambda i: (i, 0)),                 # position tile
            pl.BlockSpec((1, tok), lambda i: (i, 0)),                 # attention mask tile
            pl.BlockSpec((VOCAB, HIDDEN), lambda i: (0, 0)),          # word table (resident)
            pl.BlockSpec((MAX_POS, HIDDEN), lambda i: (0, 0)),        # pos table (resident)
            pl.BlockSpec((TYPE_VOCAB, HIDDEN), lambda i: (0, 0)),     # type table (resident)
            pl.BlockSpec((1, HIDDEN), lambda i: (0, 0)),              # gamma (resident)
            pl.BlockSpec((1, HIDDEN), lambda i: (0, 0)),              # beta (resident)
        ],
        out_specs=(
            pl.BlockSpec((tok, HIDDEN), lambda i: (i, 0)),            # embeddings
            pl.BlockSpec((1, tok), lambda i: (i, 0)),                 # extended mask
        ),
        compiler_params=pltpu.CompilerParams(
            dimension_semantics=("parallel",)),
    )(ids_2d, tt_2d, pos_2d, mask_2d, word_emb, pos_emb, type_emb, gamma, beta)

    emb = emb_pad[:N].reshape(B, S, HIDDEN)
    ext_mask = mask_pad.reshape(N_pad)[:N].reshape(B, S)
    return emb, ext_mask


# ------------------------- reference (pure JAX) -------------------------
def reference_forward(input_ids, attention_mask, token_type_ids, params):
    word_emb, pos_emb, type_emb, gamma, beta = params
    B, S = input_ids.shape
    pos_ids = jnp.arange(S, dtype=jnp.int32)[None, :].repeat(B, axis=0)
    x = word_emb[input_ids] + pos_emb[pos_ids] + type_emb[token_type_ids]
    mean = jnp.mean(x, axis=-1, keepdims=True)
    var = jnp.mean((x - mean) ** 2, axis=-1, keepdims=True)
    y = (x - mean) * lax.rsqrt(var + LN_EPS)
    emb = y * gamma.reshape(1, 1, HIDDEN) + beta.reshape(1, 1, HIDDEN)
    ext = (1.0 - attention_mask.astype(jnp.float32)) * -10000.0
    return emb, ext


# ------------------------- main -------------------------
if __name__ == "__main__":
    key = jax.random.PRNGKey(0)
    k_w, k_p, k_t, k_g, k_b, k_ids, k_tt, k_m = jax.random.split(key, 8)

    # Deterministic synthetic parameters.
    word_emb = jax.random.normal(k_w, (VOCAB, HIDDEN), jnp.float32) * 0.02
    pos_emb = jax.random.normal(k_p, (MAX_POS, HIDDEN), jnp.float32) * 0.02
    type_emb = jax.random.normal(k_t, (TYPE_VOCAB, HIDDEN), jnp.float32) * 0.02
    gamma = (1.0 + 0.1 * jax.random.normal(k_g, (1, HIDDEN), jnp.float32))
    beta = 0.1 * jax.random.normal(k_b, (1, HIDDEN), jnp.float32)
    params = (word_emb, pos_emb, type_emb, gamma, beta)

    # Small inputs: batch=2, seq=8.
    B, S = 2, 8
    input_ids = jax.random.randint(k_ids, (B, S), 0, VOCAB, jnp.int32)
    token_type_ids = jax.random.randint(k_tt, (B, S), 0, TYPE_VOCAB, jnp.int32)
    attention_mask = jax.random.randint(k_m, (B, S), 0, 2, jnp.int32)

    emb_out, ext_mask = emb_wrapper_forward(
        input_ids, attention_mask, token_type_ids, params)
    jax.block_until_ready((emb_out, ext_mask))

    emb_ref, ext_ref = reference_forward(
        input_ids, attention_mask, token_type_ids, params)

    assert emb_out.shape == (B, S, HIDDEN) and emb_out.dtype == jnp.float32
    assert ext_mask.shape == (B, S) and ext_mask.dtype == jnp.float32
    assert jnp.allclose(emb_out, emb_ref, atol=1e-5, rtol=1e-5)
    assert jnp.allclose(ext_mask, ext_ref, atol=1e-6)

    print("KERNEL_OK")
</pallas_src>

<mosaic_0001>
module attributes {stable_mosaic.version = 11 : i64} {
  func.func @emb_kernel(%arg0: i32, %arg1: memref<256x1xi32, #tpu.memory_space<vmem>>, %arg2: memref<256x1xi32, #tpu.memory_space<vmem>>, %arg3: memref<256x1xi32, #tpu.memory_space<vmem>>, %arg4: memref<1x256xi32, #tpu.memory_space<vmem>>, %arg5: memref<64x128xf32, #tpu.memory_space<vmem>>, %arg6: memref<16x128xf32, #tpu.memory_space<vmem>>, %arg7: memref<2x128xf32, #tpu.memory_space<vmem>>, %arg8: memref<1x128xf32, #tpu.memory_space<vmem>>, %arg9: memref<1x128xf32, #tpu.memory_space<vmem>>, %arg10: memref<256x128xf32, #tpu.memory_space<vmem>>, %arg11: memref<1x256xf32, #tpu.memory_space<vmem>>) attributes {dimension_semantics = [#tpu.dimension_semantics<parallel>], iteration_bounds = array<i64: 1>, scalar_prefetch = 0 : i64, scratch_operands = 0 : i64, tpu.core_type = #tpu.core_type<tc>, window_params = [{transform_indices = @transform_0, window_bounds = array<i64: 256, 1>}, {transform_indices = @transform_1, window_bounds = array<i64: 256, 1>}, {transform_indices = @transform_2, window_bounds = array<i64: 256, 1>}, {transform_indices = @transform_3, window_bounds = array<i64: 1, 256>}, {pipeline_mode = #tpu.pipeline_mode<synchronous>, transform_indices = @transform_4, window_bounds = array<i64: 64, 128>}, {pipeline_mode = #tpu.pipeline_mode<synchronous>, transform_indices = @transform_5, window_bounds = array<i64: 16, 128>}, {pipeline_mode = #tpu.pipeline_mode<synchronous>, transform_indices = @transform_6, window_bounds = array<i64: 2, 128>}, {pipeline_mode = #tpu.pipeline_mode<synchronous>, transform_indices = @transform_7, window_bounds = array<i64: 1, 128>}, {pipeline_mode = #tpu.pipeline_mode<synchronous>, transform_indices = @transform_8, window_bounds = array<i64: 1, 128>}, {transform_indices = @transform_9, window_bounds = array<i64: 256, 128>}, {transform_indices = @transform_10, window_bounds = array<i64: 1, 256>}]} {
    %c0 = arith.constant 0 : index
    %c0_0 = arith.constant 0 : index
    %0 = vector.load %arg1[%c0, %c0_0] : memref<256x1xi32, #tpu.memory_space<vmem>>, vector<256x1xi32>
    %c0_1 = arith.constant 0 : index
    %c0_2 = arith.constant 0 : index
    %1 = vector.load %arg2[%c0_1, %c0_2] : memref<256x1xi32, #tpu.memory_space<vmem>>, vector<256x1xi32>
    %c0_3 = arith.constant 0 : index
    %c0_4 = arith.constant 0 : index
    %2 = vector.load %arg3[%c0_3, %c0_4] : memref<256x1xi32, #tpu.memory_space<vmem>>, vector<256x1xi32>
    %3 = tpu.iota {dimensions = array<i32: 1>} : vector<256x64xi32>
    %4 = vector.broadcast %0 : vector<256x1xi32> to vector<256x64xi32>
    %5 = arith.cmpi eq, %4, %3 : vector<256x64xi32>
    %6 = arith.extui %5 : vector<256x64xi1> to vector<256x64xi32>
    %7 = arith.sitofp %6 : vector<256x64xi32> to vector<256x64xf32>
    %c0_5 = arith.constant 0 : index
    %c0_6 = arith.constant 0 : index
    %8 = vector.load %arg5[%c0_5, %c0_6] : memref<64x128xf32, #tpu.memory_space<vmem>>, vector<64x128xf32>
    %cst = arith.constant dense<0.000000e+00> : vector<256x128xf32>
    %9 = tpu.matmul %7, %8, %cst {dimension_numbers = #tpu.dot_dimension_numbers<[1], [0], [0], [1], [0, 0, 1, 1], [], []>} : vector<256x64xf32>, vector<64x128xf32>, vector<256x128xf32> -> vector<256x128xf32>
    %10 = tpu.iota {dimensions = array<i32: 1>} : vector<256x16xi32>
    %11 = vector.broadcast %2 : vector<256x1xi32> to vector<256x16xi32>
    %12 = arith.cmpi eq, %11, %10 : vector<256x16xi32>
    %13 = arith.extui %12 : vector<256x16xi1> to vector<256x16xi32>
    %14 = arith.sitofp %13 : vector<256x16xi32> to vector<256x16xf32>
    %c0_7 = arith.constant 0 : index
    %c0_8 = arith.constant 0 : index
    %15 = vector.load %arg6[%c0_7, %c0_8] : memref<16x128xf32, #tpu.memory_space<vmem>>, vector<16x128xf32>
    %cst_9 = arith.constant dense<0.000000e+00> : vector<256x128xf32>
    %16 = tpu.matmul %14, %15, %cst_9 {dimension_numbers = #tpu.dot_dimension_numbers<[1], [0], [0], [1], [0, 0, 1, 1], [], []>} : vector<256x16xf32>, vector<16x128xf32>, vector<256x128xf32> -> vector<256x128xf32>
    %17 = arith.addf %9, %16 : vector<256x128xf32>
    %c0_10 = arith.constant 0 : index
    %c0_11 = arith.constant 0 : index
    %18 = vector.load %arg7[%c0_10, %c0_11] : memref<2x128xf32, #tpu.memory_space<vmem>>, vector<2x128xf32>
    %c0_i32 = arith.constant 0 : i32
    %19 = vector.broadcast %c0_i32 : i32 to vector<256x1xi32>
    %20 = arith.cmpi eq, %1, %19 : vector<256x1xi32>
    %21 = vector.extract_strided_slice %18 {offsets = [0, 0], sizes = [1, 128], strides = [1, 1]} : vector<2x128xf32> to vector<1x128xf32>
    %22 = vector.extract_strided_slice %18 {offsets = [1, 0], sizes = [1, 128], strides = [1, 1]} : vector<2x128xf32> to vector<1x128xf32>
    %23 = vector.shape_cast %20 : vector<256x1xi1> to vector<256x1xi1>
    %24 = vector.broadcast %23 : vector<256x1xi1> to vector<256x128xi1>
    %25 = vector.shape_cast %21 : vector<1x128xf32> to vector<1x128xf32>
    %26 = vector.broadcast %25 : vector<1x128xf32> to vector<256x128xf32>
    %27 = vector.shape_cast %22 : vector<1x128xf32> to vector<1x128xf32>
    %28 = vector.broadcast %27 : vector<1x128xf32> to vector<256x128xf32>
    %29 = arith.select %24, %26, %28 : vector<256x128xi1>, vector<256x128xf32>
    %30 = arith.addf %17, %29 : vector<256x128xf32>
    %cst_12 = arith.constant dense<0.000000e+00> : vector<256xf32>
    %31 = vector.multi_reduction <add>, %30, %cst_12 [1] : vector<256x128xf32> to vector<256xf32>
    %32 = vector.shape_cast %31 : vector<256xf32> to vector<256x1xf32>
    %cst_13 = arith.constant 1.280000e+02 : f32
    %33 = vector.broadcast %cst_13 : f32 to vector<256x1xf32>
    %34 = arith.divf %32, %33 : vector<256x1xf32>
    %35 = vector.broadcast %34 : vector<256x1xf32> to vector<256x128xf32>
    %36 = arith.subf %30, %35 : vector<256x128xf32>
    %37 = vector.broadcast %34 : vector<256x1xf32> to vector<256x128xf32>
    %38 = arith.subf %30, %37 : vector<256x128xf32>
    %39 = arith.mulf %36, %38 : vector<256x128xf32>
    %cst_14 = arith.constant dense<0.000000e+00> : vector<256xf32>
    %40 = vector.multi_reduction <add>, %39, %cst_14 [1] : vector<256x128xf32> to vector<256xf32>
    %41 = vector.shape_cast %40 : vector<256xf32> to vector<256x1xf32>
    %cst_15 = arith.constant 1.280000e+02 : f32
    %42 = vector.broadcast %cst_15 : f32 to vector<256x1xf32>
    %43 = arith.divf %41, %42 : vector<256x1xf32>
    %44 = vector.broadcast %34 : vector<256x1xf32> to vector<256x128xf32>
    %45 = arith.subf %30, %44 : vector<256x128xf32>
    %cst_16 = arith.constant 9.99999996E-13 : f32
    %46 = vector.broadcast %cst_16 : f32 to vector<256x1xf32>
    %47 = arith.addf %43, %46 : vector<256x1xf32>
    %48 = math.rsqrt %47 : vector<256x1xf32>
    %49 = vector.broadcast %48 : vector<256x1xf32> to vector<256x128xf32>
    %50 = arith.mulf %45, %49 : vector<256x128xf32>
    %c0_17 = arith.constant 0 : index
    %c0_18 = arith.constant 0 : index
    %51 = vector.load %arg8[%c0_17, %c0_18] : memref<1x128xf32, #tpu.memory_space<vmem>>, vector<1x128xf32>
    %52 = vector.broadcast %51 : vector<1x128xf32> to vector<256x128xf32>
    %53 = arith.mulf %50, %52 : vector<256x128xf32>
    %c0_19 = arith.constant 0 : index
    %c0_20 = arith.constant 0 : index
    %54 = vector.load %arg9[%c0_19, %c0_20] : memref<1x128xf32, #tpu.memory_space<vmem>>, vector<1x128xf32>
    %55 = vector.broadcast %54 : vector<1x128xf32> to vector<256x128xf32>
    %56 = arith.addf %53, %55 : vector<256x128xf32>
    %c0_21 = arith.constant 0 : index
    %c0_22 = arith.constant 0 : index
    %57 = vector.load %arg10[%c0_21, %c0_22] : memref<256x128xf32, #tpu.memory_space<vmem>>, vector<256x128xf32>
    tpu.vector_store %arg10[%c0_21, %c0_22], %56 {strides = array<i32>} : memref<256x128xf32, #tpu.memory_space<vmem>>, vector<256x128xf32>,
    %c0_23 = arith.constant 0 : index
    %c0_24 = arith.constant 0 : index
    %58 = vector.load %arg4[%c0_23, %c0_24] : memref<1x256xi32, #tpu.memory_space<vmem>>, vector<1x256xi32>
    %59 = arith.sitofp %58 : vector<1x256xi32> to vector<1x256xf32>
    %cst_25 = arith.constant 1.000000e+00 : f32
    %60 = vector.broadcast %cst_25 : f32 to vector<1x256xf32>
    %61 = arith.subf %60, %59 : vector<1x256xf32>
    %cst_26 = arith.constant -1.000000e+04 : f32
    %62 = vector.broadcast %cst_26 : f32 to vector<1x256xf32>
    %63 = arith.mulf %61, %62 : vector<1x256xf32>
    %c0_27 = arith.constant 0 : index
    %c0_28 = arith.constant 0 : index
    %64 = vector.load %arg11[%c0_27, %c0_28] : memref<1x256xf32, #tpu.memory_space<vmem>>, vector<1x256xf32>
    tpu.vector_store %arg11[%c0_27, %c0_28], %63 {strides = array<i32>} : memref<1x256xf32, #tpu.memory_space<vmem>>, vector<1x256xf32>,
    return
  }
  func.func @transform_0(%arg0: i32) -> (i32, i32) {
    %c0_i32 = arith.constant 0 : i32
    %c0_i32_0 = arith.constant 0 : i32
    return %arg0, %c0_i32 : i32, i32
  }
  func.func @transform_1(%arg0: i32) -> (i32, i32) {
    %c0_i32 = arith.constant 0 : i32
    %c0_i32_0 = arith.constant 0 : i32
    return %arg0, %c0_i32 : i32, i32
  }
  func.func @transform_2(%arg0: i32) -> (i32, i32) {
    %c0_i32 = arith.constant 0 : i32
    %c0_i32_0 = arith.constant 0 : i32
    return %arg0, %c0_i32 : i32, i32
  }
  func.func @transform_3(%arg0: i32) -> (i32, i32) {
    %c0_i32 = arith.constant 0 : i32
    %c0_i32_0 = arith.constant 0 : i32
    return %arg0, %c0_i32 : i32, i32
  }
  func.func @transform_4(%arg0: i32) -> (i32, i32) {
    %c0_i32 = arith.constant 0 : i32
    %c0_i32_0 = arith.constant 0 : i32
    %c0_i32_1 = arith.constant 0 : i32
    return %c0_i32, %c0_i32_0 : i32, i32
  }
  func.func @transform_5(%arg0: i32) -> (i32, i32) {
    %c0_i32 = arith.constant 0 : i32
    %c0_i32_0 = arith.constant 0 : i32
    %c0_i32_1 = arith.constant 0 : i32
    return %c0_i32, %c0_i32_0 : i32, i32
  }
  func.func @transform_6(%arg0: i32) -> (i32, i32) {
    %c0_i32 = arith.constant 0 : i32
    %c0_i32_0 = arith.constant 0 : i32
    %c0_i32_1 = arith.constant 0 : i32
    return %c0_i32, %c0_i32_0 : i32, i32
  }
  func.func @transform_7(%arg0: i32) -> (i32, i32) {
    %c0_i32 = arith.constant 0 : i32
    %c0_i32_0 = arith.constant 0 : i32
    %c0_i32_1 = arith.constant 0 : i32
    return %c0_i32, %c0_i32_0 : i32, i32
  }
  func.func @transform_8(%arg0: i32) -> (i32, i32) {
    %c0_i32 = arith.constant 0 : i32
    %c0_i32_0 = arith.constant 0 : i32
    %c0_i32_1 = arith.constant 0 : i32
    return %c0_i32, %c0_i32_0 : i32, i32
  }
  func.func @transform_9(%arg0: i32) -> (i32, i32) {
    %c0_i32 = arith.constant 0 : i32
    %c0_i32_0 = arith.constant 0 : i32
    return %arg0, %c0_i32 : i32, i32
  }
  func.func @transform_10(%arg0: i32) -> (i32, i32) {
    %c0_i32 = arith.constant 0 : i32
    %c0_i32_0 = arith.constant 0 : i32
    return %arg0, %c0_i32 : i32, i32
  }
}

</mosaic_0001>

<bundles_post_ra>
// kernel: tpu_custom_call.1
= control target key start
LH: loop header
LB: loop body
LE: loop exit
PB: predicated region body
PF: predicated region fallthrough
CT: control target
= control target key end

     0   :  { %16 = vsyncpa [#allocation3], 0  ;;  %v2439_v2 = vmov 0   ;;  %s3635_s0 = inlined_call_operand.vmem [shape: s32[256,1], index: 0, kind: input, shape index: {}]   ;;  %s3636_s1 = inlined_call_operand.vmem [shape: s32[256,1], index: 1, kind: input, shape index: {}]   ;;  %s3637_s2 = inlined_call_operand.vmem [shape: s32[256,1], index: 2, kind: input, shape index: {}]   ;;  %s3638_s3 = inlined_call_operand.vmem [shape: s32[1,256], index: 3, kind: input, shape index: {}]   ;;  %s3639_s4 = inlined_call_operand.vmem [shape: f32[64,128], index: 4, kind: input, shape index: {}]   ;;  %s3640_s5 = inlined_call_operand.vmem [shape: f32[16,128], index: 5, kind: input, shape index: {}]   ;;  %s3641_s6 = inlined_call_operand.vmem [shape: f32[2,128], index: 6, kind: input, shape index: {}]   ;;  %s3642_s7 = inlined_call_operand.vmem [shape: f32[1,128], index: 7, kind: input, shape index: {}]   ;;  %s3643_s8 = inlined_call_operand.vmem [shape: f32[1,128], index: 8, kind: input, shape index: {}]   ;;  %s3644_s9 = inlined_call_operand.hbm [shape: f32[256,128], index: 9, kind: output, shape index: {0}]   ;;  %s3645_s10 = inlined_call_operand.hbm [shape: f32[1,256], index: 10, kind: output, shape index: {1}]  }
   0x1   :  { %v100_v0 = vld [vmem:[%s3637_s2] sm:$0xff]  ;;  %2326 = vset.pattern.permute.xlu1 %v2439_v2  ;;  %2325 = vset.pattern.permute.xlu0 %v2439_v2  ;;  %v101_v3 = vld [vmem:[%s3637_s2 + $0x8] sm:$0xff]  ;;  %v103_v5 = vld [vmem:[%s3637_s2 + $0x18] sm:$0xff] }
   0x2   :  { %v36_v1 = vld [vmem:[%s3635_s0] sm:$0xff]  ;;  %335 = vperm.xlu1 %2326, %v100_v0   ;;  %v37_v4 = vld [vmem:[%s3635_s0 + $0x8] sm:$0xff]  ;;  %v102_v6 = vld [vmem:[%s3637_s2 + $0x10] sm:$0xff] }
   0x3   :  { %135 = vperm.xlu0 %2325, %v36_v1   ;;  %v39_v7 = vld [vmem:[%s3635_s0 + $0x18] sm:$0xff]  ;;  %v38_v8 = vld [vmem:[%s3635_s0 + $0x10] sm:$0xff]  ;;  %v105_v9 = vld [vmem:[%s3637_s2 + $0x28] sm:$0xff] }
   0x4   :  { %v104_v10 = vld [vmem:[%s3637_s2 + $0x20] sm:$0xff]  ;;  %v41_v11 = vld [vmem:[%s3635_s0 + $0x28] sm:$0xff]  ;;  %v107_v15 = vld [vmem:[%s3637_s2 + $0x38] sm:$0xff] }
   0x5   :  { %v40_v12 = vld [vmem:[%s3635_s0 + $0x20] sm:$0xff]  ;;  %v327_v14 = vld [vmem:[%s3639_s4 + $0x8] sm:$0xff]  ;;  %v106_v16 = vld [vmem:[%s3637_s2 + $0x30] sm:$0xff] }
   0x6   :  { %338 = vperm.xlu1 %2326, %v101_v3   ;;  %v326_v13 = vld [vmem:[%s3639_s4] sm:$0xff]  ;;  %v527_v19 = vld [vmem:[%s3640_s5 + $0x8] sm:$0xff]  ;;  %v328_v20 = vld [vmem:[%s3639_s4 + $0x10] sm:$0xff] }
   0x7   :  { %138 = vperm.xlu0 %2325, %v37_v4   ;;  %v2550_v17 = vpack.c.bf16 %v327_v14, %v326_v13  ;;  %v526_v18 = vld [vmem:[%s3640_s5] sm:$0xff]  ;;  %v329_v21 = vld [vmem:[%s3639_s4 + $0x18] sm:$0xff]  ;;  %v331_v25 = vld [vmem:[%s3639_s4 + $0x28] sm:$0xff] }
   0x8   :  { %v2259_v22 = vpack.c.bf16 %v527_v19, %v526_v18  ;;  %v2565_v23 = vpack.c.bf16 %v329_v21, %v328_v20  ;;  %v330_v24 = vld [vmem:[%s3639_s4 + $0x20] sm:$0xff]  ;;  %v43_v26 = vld [vmem:[%s3635_s0 + $0x38] sm:$0xff]  ;;  %v42_v27 = vld [vmem:[%s3635_s0 + $0x30] sm:$0xff] }
   0x9   :  { %2279 = vmatprep.subr.bf16.mxu1 %v2550_v17  ;;  %v2581_v28 = vpack.c.bf16 %v331_v25, %v330_v24  ;;  %v332_v29 = vld [vmem:[%s3639_s4 + $0x30] sm:$0xff]  ;;  %v333_v30 = vld [vmem:[%s3639_s4 + $0x38] sm:$0xff]  ;;  %v109_v31 = vld [vmem:[%s3637_s2 + $0x48] sm:$0xff] }
   0xa   :  { %344 = vperm.xlu1 %2326, %v103_v5   ;;  %2283 = vmatpush3.bf16.msra.mxu1 %v2550_v17  ;;  %v108_v32 = vld [vmem:[%s3637_s2 + $0x40] sm:$0xff]  ;;  %v2598_v33 = vpack.c.bf16 %v333_v30, %v332_v29 }
   0xb   :  { %341 = vperm.xlu0 %2325, %v102_v6   ;;  %2260 = vmatprep.subr.bf16.mxu0 %v2259_v22 }
   0xc   :  { %2280 = vmatprep.subr.bf16.mxu1 %v2565_v23  ;;  %2262 = vmatpush3.bf16.msra.mxu0 %v2259_v22 }
   0xd   :  { %2264 = vmatprep.subr.bf16.mxu0 %v2550_v17 }
   0xe   :  { %144 = vperm.xlu1 %2326, %v39_v7   ;;  %2284 = vmatpush3.bf16.msra.mxu1 %v2565_v23 }
   0xf   :  { %141 = vperm.xlu0 %2325, %v38_v8   ;;  %2281 = vmatprep.subr.bf16.mxu1 %v2581_v28 }
  0x12   :  { %350 = vperm.xlu1 %2326, %v105_v9  }
  0x13   :  { %347 = vperm.xlu0 %2325, %v104_v10  }
  0x16   :  { %150 = vperm.xlu1 %2326, %v41_v11  }
  0x17   :  { %147 = vperm.xlu0 %2325, %v40_v12  }
  0x1a   :  { %356 = vperm.xlu1 %2326, %v107_v15  }
  0x1b   :  { %353 = vperm.xlu0 %2325, %v106_v16  }
  0x1e   :  { %156 = vperm.xlu1 %2326, %v43_v26  }
  0x1f   :  { %153 = vperm.xlu0 %2325, %v42_v27  }
  0x20   :  { %17 = vsyncpa [#allocation5], 0  ;;  %2285 = vmatpush3.bf16.msra.mxu1 %v2581_v28  ;;  %v45_v34 = vld [vmem:[%s3635_s0 + $0x48] sm:$0xff]  ;;  %v44_v35 = vld [vmem:[%s3635_s0 + $0x40] sm:$0xff]  ;;  %v132_v18 = vlaneseq  ;;  %vm528_vm4 = vcmask 130048   ;;  %vm850_vm15 = vcmask 523264  }
  0x21   :  { %2282 = vmatprep.subr.bf16.mxu1 %v2598_v33  ;;  %v111_v36 = vld [vmem:[%s3637_s2 + $0x58] sm:$0xff]  ;;  %v110_v37 = vld [vmem:[%s3637_s2 + $0x50] sm:$0xff]  ;;  %v113_v40 = vld [vmem:[%s3637_s2 + $0x68] sm:$0xff]  ;;  %s2441_s26 = smov [#allocation4]  }
  0x22   :  { %362 = vperm.xlu1 %2326, %v109_v31   ;;  %v47_v38 = vld [vmem:[%s3635_s0 + $0x58] sm:$0xff]  ;;  %v46_v39 = vld [vmem:[%s3635_s0 + $0x50] sm:$0xff]  ;;  %v112_v41 = vld [vmem:[%s3637_s2 + $0x60] sm:$0xff]  ;;  %v2754_v24 = vand.u32 127, %v132_v18  ;;  %s1927_s27 = sshll.u32 %s2441_s26, 4  ;;  %s1928_s27 = int_to_ptr.vmem [resolvable:$true] %s1927_s27 }
  0x23   :  { %359 = vperm.xlu0 %2325, %v108_v32   ;;  %v49_v42 = vld [vmem:[%s3635_s0 + $0x68] sm:$0xff]  ;;  %v48_v43 = vld [vmem:[%s3635_s0 + $0x60] sm:$0xff]  ;;  %v115_v44 = vld [vmem:[%s3637_s2 + $0x78] sm:$0xff]  ;;  %v2440_v32 = vmov 0.0   ;;  %p2396_p1 = scmp.lt.s32.totalorder %s1928_s27, %s1928_s27 }
  0x24   :  { %2286 = vmatpush3.bf16.msra.mxu1 %v2598_v33  ;;  %v114_v45 = vld [vmem:[%s3637_s2 + $0x70] sm:$0xff]  ;;  %v51_v46 = vld [vmem:[%s3635_s0 + $0x78] sm:$0xff]  ;;  %v117_v48 = vld [vmem:[%s3637_s2 + $0x88] sm:$0xff] }
  0x25   :  { %v50_v47 = vld [vmem:[%s3635_s0 + $0x70] sm:$0xff]  ;;  %v116_v49 = vld [vmem:[%s3637_s2 + $0x80] sm:$0xff]  ;;  %v53_v50 = vld [vmem:[%s3635_s0 + $0x88] sm:$0xff] }
  0x26   :  { %162 = vperm.xlu1 %2326, %v45_v34   ;;  %v52_v51 = vld [vmem:[%s3635_s0 + $0x80] sm:$0xff]  ;;  %v119_v52 = vld [vmem:[%s3637_s2 + $0x98] sm:$0xff]  ;;  %v118_v53 = vld [vmem:[%s3637_s2 + $0x90] sm:$0xff] }
  0x27   :  { %159 = vperm.xlu0 %2325, %v44_v35   ;;  %v55_v54 = vld [vmem:[%s3635_s0 + $0x98] sm:$0xff]  ;;  %v54_v55 = vld [vmem:[%s3635_s0 + $0x90] sm:$0xff]  ;;  %v121_v56 = vld [vmem:[%s3637_s2 + $0xa8] sm:$0xff] }
  0x28   :  { %v120_v57 = vld [vmem:[%s3637_s2 + $0xa0] sm:$0xff]  ;;  %v57_v58 = vld [vmem:[%s3635_s0 + $0xa8] sm:$0xff]  ;;  %v123_v60 = vld [vmem:[%s3637_s2 + $0xb8] sm:$0xff] }
  0x29   :  { %v56_v59 = vld [vmem:[%s3635_s0 + $0xa0] sm:$0xff]  ;;  %v122_v61 = vld [vmem:[%s3637_s2 + $0xb0] sm:$0xff]  ;;  %v59_v62 = vld [vmem:[%s3635_s0 + $0xb8] sm:$0xff] }
  0x2a   :  { %368 = vperm.xlu1 %2326, %v111_v36   ;;  %v58_v63 = vld [vmem:[%s3635_s0 + $0xb0] sm:$0xff]  ;;  %v125_v0 = vld [vmem:[%s3637_s2 + $0xc8] sm:$0xff]  ;;  %v124_v1 = vld [vmem:[%s3637_s2 + $0xc0] sm:$0xff] }
  0x2b   :  { %365 = vperm.xlu0 %2325, %v110_v37   ;;  %v61_v3 = vld [vmem:[%s3635_s0 + $0xc8] sm:$0xff]  ;;  %v60_v4 = vld [vmem:[%s3635_s0 + $0xc0] sm:$0xff]  ;;  %v127_v5 = vld [vmem:[%s3637_s2 + $0xd8] sm:$0xff] }
  0x2c   :  { %v126_v6 = vld [vmem:[%s3637_s2 + $0xd0] sm:$0xff]  ;;  %v63_v7 = vld [vmem:[%s3635_s0 + $0xd8] sm:$0xff]  ;;  %v129_v9 = vld [vmem:[%s3637_s2 + $0xe8] sm:$0xff] }
  0x2d   :  { %v62_v8 = vld [vmem:[%s3635_s0 + $0xd0] sm:$0xff]  ;;  %v128_v10 = vld [vmem:[%s3637_s2 + $0xe0] sm:$0xff]  ;;  %v65_v11 = vld [vmem:[%s3635_s0 + $0xe8] sm:$0xff] }
  0x2e   :  { %168 = vperm.xlu1 %2326, %v47_v38   ;;  %v64_v12 = vld [vmem:[%s3635_s0 + $0xe0] sm:$0xff]  ;;  %v131_v13 = vld [vmem:[%s3637_s2 + $0xf8] sm:$0xff]  ;;  %v130_v14 = vld [vmem:[%s3637_s2 + $0xf0] sm:$0xff] }
  0x2f   :  { %165 = vperm.xlu0 %2325, %v46_v39   ;;  %v69_v15 = vld [vmem:[%s3636_s1 + $0x8] sm:$0xff]  ;;  %v68_v16 = vld [vmem:[%s3636_s1] sm:$0xff]  ;;  %v67_v19 = vld [vmem:[%s3635_s0 + $0xf8] sm:$0xff] }
  0x30   :  { %v66_v20 = vld [vmem:[%s3635_s0 + $0xf0] sm:$0xff]  ;;  %vm1174_vm0 = vcmp.eq.s32.totalorder %v69_v15, 0  ;;  %vm1173_vm1 = vcmp.eq.s32.totalorder %v68_v16, 0  ;;  %v71_v21 = vld [vmem:[%s3636_s1 + $0x18] sm:$0xff]  ;;  %v73_v30 = vld [vmem:[%s3636_s1 + $0x28] sm:$0xff] }
  0x31   :  { %v70_v22 = vld [vmem:[%s3636_s1 + $0x10] sm:$0xff]  ;;  %v1206_v25 = vsel %vm1174_vm0, 1, %v2439_v2  ;;  %v1205_v26 = vsel %vm1173_vm1, 1, %v2439_v2  ;;  %vm1176_vm2 = vcmp.eq.s32.totalorder %v71_v21, 0  ;;  %v72_v31 = vld [vmem:[%s3636_s1 + $0x20] sm:$0xff]  ;;  %vm1178_vm6 = vcmp.eq.s32.totalorder %v73_v30, 0 }
  0x32   :  { %374 = vperm.xlu1 %2326, %v113_v40   ;;  %vm1175_vm3 = vcmp.eq.s32.totalorder %v70_v22, 0  ;;  %v1208_v35 = vsel %vm1176_vm2, 1, %v2439_v2  ;;  %vm1177_vm7 = vcmp.eq.s32.totalorder %v72_v31, 0  ;;  %v75_v39 = vld [vmem:[%s3636_s1 + $0x38] sm:$0xff]  ;;  %v74_v40 = vld [vmem:[%s3636_s1 + $0x30] sm:$0xff] }
  0x33   :  { %371 = vperm.xlu0 %2325, %v112_v41   ;;  %v1207_v36 = vsel %vm1175_vm3, 1, %v2439_v2  ;;  %vm1180_vm9 = vcmp.eq.s32.totalorder %v75_v39, 0  ;;  %vm1179_vm10 = vcmp.eq.s32.totalorder %v74_v40, 0  ;;  %v87_v21 = vld [vmem:[%s3636_s1 + $0x98] sm:$0xff]  ;;  %v86_v22 = vld [vmem:[%s3636_s1 + $0x90] sm:$0xff] }
  0x36   :  { %174 = vperm.xlu1 %2326, %v49_v42   ;;  %v1210_v42 = vsel %vm1178_vm6, 1, %v2439_v2 }
  0x37   :  { %171 = vperm.xlu0 %2325, %v48_v43   ;;  %v1209_v43 = vsel %vm1177_vm7, 1, %v2439_v2 }
  0x3a   :  { %380 = vperm.xlu1 %2326, %v115_v44  }
  0x3b   :  { %377 = vperm.xlu0 %2325, %v114_v45  }
  0x3e   :  { %180 = vperm.xlu1 %2326, %v51_v46   ;;  %v77_v46 = vld [vmem:[%s3636_s1 + $0x48] sm:$0xff] }
  0x3f   :  { %177 = vperm.xlu0 %2325, %v50_v47   ;;  %v76_v47 = vld [vmem:[%s3636_s1 + $0x40] sm:$0xff]  ;;  %vm1182_vm13 = vcmp.eq.s32.totalorder %v77_v46, 0 }
  0x40   :  { %vm1181_vm14 = vcmp.eq.s32.totalorder %v76_v47, 0 }
  0x42   :  { %386 = vperm.xlu1 %2326, %v117_v48  }
  0x43   :  { %383 = vperm.xlu0 %2325, %v116_v49  }
  0x46   :  { %186 = vperm.xlu1 %2326, %v53_v50   ;;  %v1212_v50 = vsel %vm1180_vm9, 1, %v2439_v2 }
  0x47   :  { %183 = vperm.xlu0 %2325, %v52_v51   ;;  %v1211_v51 = vsel %vm1179_vm10, 1, %v2439_v2 }
  0x4a   :  { %392 = vperm.xlu1 %2326, %v119_v52  }
  0x4b   :  { %389 = vperm.xlu0 %2325, %v118_v53   ;;  %v79_v53 = vld [vmem:[%s3636_s1 + $0x58] sm:$0xff] }
  0x4c   :  { %vm1184_vm2 = vcmp.eq.s32.totalorder %v79_v53, 0 }
  0x4e   :  { %192 = vperm.xlu1 %2326, %v55_v54   ;;  %v78_v54 = vld [vmem:[%s3636_s1 + $0x50] sm:$0xff] }
  0x4f   :  { %189 = vperm.xlu0 %2325, %v54_v55   ;;  %vm1183_vm3 = vcmp.eq.s32.totalorder %v78_v54, 0 }
  0x52   :  { %398 = vperm.xlu1 %2326, %v121_v56  }
  0x53   :  { %395 = vperm.xlu0 %2325, %v120_v57   ;;  %v1214_v57 = vsel %vm1182_vm13, 1, %v2439_v2 }
  0x56   :  { %198 = vperm.xlu1 %2326, %v57_v58   ;;  %v1213_v58 = vsel %vm1181_vm14, 1, %v2439_v2 }
  0x57   :  { %195 = vperm.xlu0 %2325, %v56_v59  }
  0x5a   :  { %404 = vperm.xlu1 %2326, %v123_v60  }
  0x5b   :  { %401 = vperm.xlu0 %2325, %v122_v61   ;;  %v81_v61 = vld [vmem:[%s3636_s1 + $0x68] sm:$0xff] }
  0x5c   :  { %vm1186_vm7 = vcmp.eq.s32.totalorder %v81_v61, 0 }
  0x5e   :  { %204 = vperm.xlu1 %2326, %v59_v62   ;;  %v80_v62 = vld [vmem:[%s3636_s1 + $0x60] sm:$0xff] }
  0x5f   :  { %201 = vperm.xlu0 %2325, %v58_v63  }
  0x62   :  { %410 = vperm.xlu1 %2326, %v125_v0   ;;  %v1216_v0 = vsel %vm1184_vm2, 1, %v2439_v2 }
  0x63   :  { %407 = vperm.xlu0 %2325, %v124_v1   ;;  %v1215_v1 = vsel %vm1183_vm3, 1, %v2439_v2 }
  0x66   :  { %210 = vperm.xlu1 %2326, %v61_v3  }
  0x67   :  { %207 = vperm.xlu0 %2325, %v60_v4  }
  0x6a   :  { %416 = vperm.xlu1 %2326, %v127_v5   ;;  %v83_v5 = vld [vmem:[%s3636_s1 + $0x78] sm:$0xff] }
  0x6b   :  { %413 = vperm.xlu0 %2325, %v126_v6   ;;  %v82_v6 = vld [vmem:[%s3636_s1 + $0x70] sm:$0xff] }
  0x6e   :  { %216 = vperm.xlu1 %2326, %v63_v7  }
  0x6f   :  { %213 = vperm.xlu0 %2325, %v62_v8   ;;  %v1218_v8 = vsel %vm1186_vm7, 1, %v2439_v2 }
  0x72   :  { %422 = vperm.xlu1 %2326, %v129_v9  }
  0x73   :  { %419 = vperm.xlu0 %2325, %v128_v10  }
  0x76   :  { %222 = vperm.xlu1 %2326, %v65_v11  }
  0x77   :  { %219 = vperm.xlu0 %2325, %v64_v12   ;;  %v85_v12 = vld [vmem:[%s3636_s1 + $0x88] sm:$0xff] }
  0x7a   :  { %428 = vperm.xlu1 %2326, %v131_v13   ;;  %v84_v13 = vld [vmem:[%s3636_s1 + $0x80] sm:$0xff] }
  0x7b   :  { %425 = vperm.xlu0 %2325, %v130_v14  }
  0x7e   :  { %228 = vperm.xlu1 %2326, %v67_v19  }
  0x7f   :  { %225 = vperm.xlu0 %2325, %v66_v20  }
  0x81   :  { %v336_v27 = vpop.permute.xlu1 %335 }
  0x82   :  { %v2758_v29 = vpop.permute.xlu0 %135  ;;  %1241 = vperm.xlu1 %2326, %v1206_v25   ;;  %vm430_vm5 = vcmp.eq.s32.totalorder %v336_v27, %v2754_v24 }
  0x83   :  { %1238 = vperm.xlu0 %2325, %v1205_v26   ;;  %v1971_v34 = vsel %vm430_vm5, 1.0, %v2440_v32 }
  0x84   :  { %2147 = vmatprep.mubr.msk.f32.mxu0 %vm528_vm4, %v1971_v34 }
  0x85   :  { %v339_v37 = vpop.permute.xlu1 %338 }
  0x86   :  { %v2771_v38 = vpop.permute.xlu0 %138  ;;  %vm431_vm8 = vcmp.eq.s32.totalorder %v339_v37, %v2754_v24  ;;  %1247 = vperm.xlu1 %2326, %v1208_v35   ;;  %v89_v35 = vld [vmem:[%s3636_s1 + $0xa8] sm:$0xff] }
  0x87   :  { %1244 = vperm.xlu0 %2325, %v1207_v36   ;;  %v1972_v41 = vsel %vm431_vm8, 1.0, %v2440_v32  ;;  %vm1185_vm8 = vcmp.eq.s32.totalorder %v80_v62, 0  ;;  %v88_v36 = vld [vmem:[%s3636_s1 + $0xa0] sm:$0xff] }
  0x88   :  { %2148 = vmatmul.mubr.msk.f32.vlgmr.msra.gmra.mrb[0].mxu0 %vm528_vm4, %v1972_v41  ;;  %v1217_v9 = vsel %vm1185_vm8, 1, %v2439_v2 }
  0x89   :  { %v345_v44 = vpop.permute.xlu1 %344  ;;  %2266 = vmatpush3.bf16.msra.mxu0 %v2550_v17 }
  0x8a   :  { %v342_v45 = vpop.permute.xlu0 %341  ;;  %vm433_vm11 = vcmp.eq.s32.totalorder %v345_v44, %v2754_v24  ;;  %1253 = vperm.xlu1 %2326, %v1210_v42   ;;  %2268 = vmatprep.subr.bf16.mxu0 %v2565_v23  ;;  %v91_v44 = vld [vmem:[%s3636_s1 + $0xb8] sm:$0xff] }
  0x8b   :  { %vm432_vm12 = vcmp.eq.s32.totalorder %v342_v45, %v2754_v24  ;;  %1250 = vperm.xlu0 %2325, %v1209_v43   ;;  %v1974_v48 = vsel %vm433_vm11, 1.0, %v2440_v32  ;;  %vm1188_vm11 = vcmp.eq.s32.totalorder %v83_v5, 0  ;;  %v90_v45 = vld [vmem:[%s3636_s1 + $0xb0] sm:$0xff] }
  0x8c   :  { %v1973_v49 = vsel %vm432_vm12, 1.0, %v2440_v32  ;;  %vm1187_vm12 = vcmp.eq.s32.totalorder %v82_v6, 0  ;;  %v1220_v15 = vsel %vm1188_vm11, 1, %v2439_v2 }
  0x8d   :  { %2150 = vmatprep.mubr.msk.f32.mxu0 %vm528_vm4, %v1973_v49  ;;  %v145_v17 = vpop.permute.xlu1 %144  ;;  %2270 = vmatpush3.bf16.msra.mxu0 %v2565_v23  ;;  %v1219_v16 = vsel %vm1187_vm12, 1, %v2439_v2 }
  0x8e   :  { %2151 = vmatmul.mubr.msk.f32.gmra.mrb[2].mxu0 %vm528_vm4, %v1974_v48  ;;  %v142_v52 = vpop.permute.xlu0 %141  ;;  %vm233_vm0 = vcmp.eq.s32.totalorder %v145_v17, %v2754_v24  ;;  %1259 = vperm.xlu1 %2326, %v1212_v50   ;;  %v93_v17 = vld [vmem:[%s3636_s1 + $0xc8] sm:$0xff] }
  0x8f   :  { %1256 = vperm.xlu0 %2325, %v1211_v51   ;;  %vm232_vm1 = vcmp.eq.s32.totalorder %v142_v52, %v2754_v24  ;;  %v1942_v55 = vsel %vm233_vm0, 1.0, %v2440_v32  ;;  %2272 = vmatprep.subr.bf16.mxu0 %v2581_v28  ;;  %vm1190_vm0 = vcmp.eq.s32.totalorder %v85_v12, 0  ;;  %v92_v52 = vld [vmem:[%s3636_s1 + $0xc0] sm:$0xff] }
  0x90   :  { %v1941_v56 = vsel %vm232_vm1, 1.0, %v2440_v32  ;;  %vm1189_vm1 = vcmp.eq.s32.totalorder %v84_v13, 0  ;;  %v1222_v27 = vsel %vm1190_vm0, 1, %v2439_v2 }
  0x91   :  { %2214 = vmatprep.mubr.msk.f32.mxu1 %vm850_vm15, %v1941_v56  ;;  %v351_v59 = vpop.permute.xlu1 %350  ;;  %2274 = vmatpush3.bf16.msra.mxu0 %v2581_v28  ;;  %v1221_v30 = vsel %vm1189_vm1, 1, %v2439_v2 }
  0x92   :  { %2215 = vmatmul.mubr.msk.f32.vlgmr.msra.gmra.mrb[0].mxu1 %vm850_vm15, %v1942_v55  ;;  %v348_v60 = vpop.permute.xlu0 %347  ;;  %vm435_vm5 = vcmp.eq.s32.totalorder %v351_v59, %v2754_v24  ;;  %1265 = vperm.xlu1 %2326, %v1214_v57   ;;  %v95_v59 = vld [vmem:[%s3636_s1 + $0xd8] sm:$0xff] }
  0x93   :  { %vm434_vm6 = vcmp.eq.s32.totalorder %v348_v60, %v2754_v24  ;;  %1262 = vperm.xlu0 %2325, %v1213_v58   ;;  %v1976_v23 = vsel %vm435_vm5, 1.0, %v2440_v32  ;;  %2276 = vmatprep.subr.bf16.mxu0 %v2598_v33  ;;  %vm1192_vm5 = vcmp.eq.s32.totalorder %v87_v21, 0  ;;  %v94_v60 = vld [vmem:[%s3636_s1 + $0xd0] sm:$0xff] }
  0x94   :  { %v1975_v63 = vsel %vm434_vm6, 1.0, %v2440_v32  ;;  %vm1191_vm6 = vcmp.eq.s32.totalorder %v86_v22, 0  ;;  %v1224_v40 = vsel %vm1192_vm5, 1, %v2439_v2 }
  0x95   :  { %2153 = vmatprep.mubr.msk.f32.mxu0 %vm528_vm4, %v1975_v63  ;;  %v151_v3 = vpop.permute.xlu1 %150  ;;  %2278 = vmatpush3.bf16.msra.mxu0 %v2598_v33  ;;  %v1223_v41 = vsel %vm1191_vm6, 1, %v2439_v2 }
  0x96   :  { %2154 = vmatmul.mubr.msk.f32.gmra.mrb[4].mxu0 %vm528_vm4, %v1976_v23  ;;  %v148_v4 = vpop.permute.xlu0 %147  ;;  %vm235_vm9 = vcmp.eq.s32.totalorder %v151_v3, %v2754_v24  ;;  %1271 = vperm.xlu1 %2326, %v1216_v0   ;;  %v97_v3 = vld [vmem:[%s3636_s1 + $0xe8] sm:$0xff] }
  0x97   :  { %vm234_vm10 = vcmp.eq.s32.totalorder %v148_v4, %v2754_v24  ;;  %1268 = vperm.xlu0 %2325, %v1215_v1   ;;  %v1944_v28 = vsel %vm235_vm9, 1.0, %v2440_v32  ;;  %vm1194_vm9 = vcmp.eq.s32.totalorder %v89_v35, 0  ;;  %v96_v4 = vld [vmem:[%s3636_s1 + $0xe0] sm:$0xff] }
  0x98   :  { %v1943_v7 = vsel %vm234_vm10, 1.0, %v2440_v32  ;;  %vm1193_vm10 = vcmp.eq.s32.totalorder %v88_v36, 0  ;;  %v1226_v48 = vsel %vm1194_vm9, 1, %v2439_v2 }
  0x99   :  { %2217 = vmatprep.mubr.msk.f32.mxu1 %vm850_vm15, %v1943_v7  ;;  %v357_v10 = vpop.permute.xlu1 %356  ;;  %v1225_v49 = vsel %vm1193_vm10, 1, %v2439_v2 }
  0x9a   :  { %2218 = vmatmul.mubr.msk.f32.gmra.mrb[2].mxu1 %vm850_vm15, %v1944_v28  ;;  %v354_v11 = vpop.permute.xlu0 %353  ;;  %vm437_vm13 = vcmp.eq.s32.totalorder %v357_v10, %v2754_v24  ;;  %1277 = vperm.xlu1 %2326, %v1218_v8   ;;  %v99_v10 = vld [vmem:[%s3636_s1 + $0xf8] sm:$0xff] }
  0x9b   :  { %vm436_vm14 = vcmp.eq.s32.totalorder %v354_v11, %v2754_v24  ;;  %1274 = vperm.xlu0 %2325, %v1217_v9   ;;  %v1978_v33 = vsel %vm437_vm13, 1.0, %v2440_v32  ;;  %vm1196_vm13 = vcmp.eq.s32.totalorder %v91_v44, 0  ;;  %v98_v11 = vld [vmem:[%s3636_s1 + $0xf0] sm:$0xff] }
  0x9c   :  { %v1977_v14 = vsel %vm436_vm14, 1.0, %v2440_v32  ;;  %vm1195_vm14 = vcmp.eq.s32.totalorder %v90_v45, 0  ;;  %v1228_v55 = vsel %vm1196_vm13, 1, %v2439_v2 }
  0x9d   :  { %2156 = vmatprep.mubr.msk.f32.mxu0 %vm528_vm4, %v1977_v14  ;;  %v157_v19 = vpop.permute.xlu1 %156  ;;  %v1227_v56 = vsel %vm1195_vm14, 1, %v2439_v2 }
  0x9e   :  { %2157 = vmatmul.mubr.msk.f32.gmra.mrb[6].mxu0 %vm528_vm4, %v1978_v33  ;;  %v154_v20 = vpop.permute.xlu0 %153  ;;  %vm237_vm2 = vcmp.eq.s32.totalorder %v157_v19, %v2754_v24  ;;  %1283 = vperm.xlu1 %2326, %v1220_v15  }
  0x9f   :  { %vm236_vm3 = vcmp.eq.s32.totalorder %v154_v20, %v2754_v24  ;;  %1280 = vperm.xlu0 %2325, %v1219_v16   ;;  %v1946_v25 = vsel %vm237_vm2, 1.0, %v2440_v32  ;;  %vm1198_vm2 = vcmp.eq.s32.totalorder %v93_v17, 0 }
  0xa0   :  { %v1945_v26 = vsel %vm236_vm3, 1.0, %v2440_v32  ;;  %vm1197_vm3 = vcmp.eq.s32.totalorder %v92_v52, 0  ;;  %v1230_v23 = vsel %vm1198_vm2, 1, %v2439_v2 }
  0xa1   :  { %2220 = vmatprep.mubr.msk.f32.mxu1 %vm850_vm15, %v1945_v26  ;;  %v363_v31 = vpop.permute.xlu1 %362  ;;  %v1229_v63 = vsel %vm1197_vm3, 1, %v2439_v2 }
  0xa2   :  { %2221 = vmatmul.mubr.msk.f32.gmra.mrb[4].mxu1 %vm850_vm15, %v1946_v25  ;;  %v360_v34 = vpop.permute.xlu0 %359  ;;  %vm439_vm7 = vcmp.eq.s32.totalorder %v363_v31, %v2754_v24  ;;  %1289 = vperm.xlu1 %2326, %v1222_v27  }
  0xa3   :  { %vm438_vm8 = vcmp.eq.s32.totalorder %v360_v34, %v2754_v24  ;;  %1286 = vperm.xlu0 %2325, %v1221_v30   ;;  %v1980_v37 = vsel %vm439_vm7, 1.0, %v2440_v32  ;;  %vm1200_vm7 = vcmp.eq.s32.totalorder %v95_v59, 0 }
  0xa4   :  { %v1979_v39 = vsel %vm438_vm8, 1.0, %v2440_v32  ;;  %vm1199_vm8 = vcmp.eq.s32.totalorder %v94_v60, 0  ;;  %v1232_v28 = vsel %vm1200_vm7, 1, %v2439_v2 }
  0xa5   :  { %2159 = vmatprep.mubr.msk.f32.mxu0 %vm528_vm4, %v1979_v39  ;;  %v163_v42 = vpop.permute.xlu1 %162  ;;  %v1231_v7 = vsel %vm1199_vm8, 1, %v2439_v2 }
  0xa6   :  { %2160 = vmatmul.mubr.msk.f32.gmra.mrb[8].mxu0 %vm528_vm4, %v1980_v37  ;;  %v160_v43 = vpop.permute.xlu0 %159  ;;  %vm239_vm11 = vcmp.eq.s32.totalorder %v163_v42, %v2754_v24  ;;  %1295 = vperm.xlu1 %2326, %v1224_v40  }
  0xa7   :  { %vm238_vm12 = vcmp.eq.s32.totalorder %v160_v43, %v2754_v24  ;;  %1292 = vperm.xlu0 %2325, %v1223_v41   ;;  %v1948_v46 = vsel %vm239_vm11, 1.0, %v2440_v32  ;;  %vm1202_vm11 = vcmp.eq.s32.totalorder %v97_v3, 0 }
  0xa8   :  { %v1947_v47 = vsel %vm238_vm12, 1.0, %v2440_v32  ;;  %vm1201_vm12 = vcmp.eq.s32.totalorder %v96_v4, 0  ;;  %v1234_v33 = vsel %vm1202_vm11, 1, %v2439_v2 }
  0xa9   :  { %2223 = vmatprep.mubr.msk.f32.mxu1 %vm850_vm15, %v1947_v47  ;;  %v369_v50 = vpop.permute.xlu1 %368  ;;  %v1233_v14 = vsel %vm1201_vm12, 1, %v2439_v2 }
  0xaa   :  { %2224 = vmatmul.mubr.msk.f32.gmra.mrb[6].mxu1 %vm850_vm15, %v1948_v46  ;;  %v366_v51 = vpop.permute.xlu0 %365  ;;  %vm441_vm0 = vcmp.eq.s32.totalorder %v369_v50, %v2754_v24  ;;  %1301 = vperm.xlu1 %2326, %v1226_v48  }
  0xab   :  { %vm440_vm1 = vcmp.eq.s32.totalorder %v366_v51, %v2754_v24  ;;  %1298 = vperm.xlu0 %2325, %v1225_v49   ;;  %v1982_v53 = vsel %vm441_vm0, 1.0, %v2440_v32  ;;  %vm1204_vm0 = vcmp.eq.s32.totalorder %v99_v10, 0 }
  0xac   :  { %v1981_v54 = vsel %vm440_vm1, 1.0, %v2440_v32  ;;  %vm1203_vm1 = vcmp.eq.s32.totalorder %v98_v11, 0  ;;  %v1236_v21 = vsel %vm1204_vm0, 1, %v2439_v2 }
  0xad   :  { %2162 = vmatprep.mubr.msk.f32.mxu0 %vm528_vm4, %v1981_v54  ;;  %v169_v57 = vpop.permute.xlu1 %168  ;;  %v1235_v22 = vsel %vm1203_vm1, 1, %v2439_v2 }
  0xae   :  { %2163 = vmatmul.mubr.msk.f32.gmra.mrb[10].mxu0 %vm528_vm4, %v1982_v53  ;;  %v166_v58 = vpop.permute.xlu0 %165  ;;  %vm241_vm5 = vcmp.eq.s32.totalorder %v169_v57, %v2754_v24  ;;  %1307 = vperm.xlu1 %2326, %v1228_v55  }
  0xaf   :  { %vm240_vm6 = vcmp.eq.s32.totalorder %v166_v58, %v2754_v24  ;;  %1304 = vperm.xlu0 %2325, %v1227_v56   ;;  %v1950_v61 = vsel %vm241_vm5, 1.0, %v2440_v32 }
  0xb0   :  { %v1949_v62 = vsel %vm240_vm6, 1.0, %v2440_v32 }
  0xb1   :  { %2226 = vmatprep.mubr.msk.f32.mxu1 %vm850_vm15, %v1949_v62  ;;  %v375_v0 = vpop.permute.xlu1 %374 }
  0xb2   :  { %2227 = vmatmul.mubr.msk.f32.gmra.mrb[8].mxu1 %vm850_vm15, %v1950_v61  ;;  %v372_v1 = vpop.permute.xlu0 %371  ;;  %vm443_vm9 = vcmp.eq.s32.totalorder %v375_v0, %v2754_v24  ;;  %1313 = vperm.xlu1 %2326, %v1230_v23  }
  0xb3   :  { %vm442_vm10 = vcmp.eq.s32.totalorder %v372_v1, %v2754_v24  ;;  %1310 = vperm.xlu0 %2325, %v1229_v63   ;;  %v1984_v5 = vsel %vm443_vm9, 1.0, %v2440_v32 }
  0xb4   :  { %v1983_v6 = vsel %vm442_vm10, 1.0, %v2440_v32 }
  0xb5   :  { %2165 = vmatprep.mubr.msk.f32.mxu0 %vm528_vm4, %v1983_v6  ;;  %v175_v8 = vpop.permute.xlu1 %174 }
  0xb6   :  { %2166 = vmatmul.mubr.msk.f32.gmra.mrb[12].mxu0 %vm528_vm4, %v1984_v5  ;;  %v172_v9 = vpop.permute.xlu0 %171  ;;  %vm243_vm13 = vcmp.eq.s32.totalorder %v175_v8, %v2754_v24  ;;  %1319 = vperm.xlu1 %2326, %v1232_v28  }
  0xb7   :  { %vm242_vm14 = vcmp.eq.s32.totalorder %v172_v9, %v2754_v24  ;;  %1316 = vperm.xlu0 %2325, %v1231_v7   ;;  %v1952_v12 = vsel %vm243_vm13, 1.0, %v2440_v32 }
  0xb8   :  { %v1951_v13 = vsel %vm242_vm14, 1.0, %v2440_v32 }
  0xb9   :  { %2229 = vmatprep.mubr.msk.f32.mxu1 %vm850_vm15, %v1951_v13  ;;  %v381_v15 = vpop.permute.xlu1 %380 }
  0xba   :  { %2230 = vmatmul.mubr.msk.f32.gmra.mrb[10].mxu1 %vm850_vm15, %v1952_v12  ;;  %v378_v16 = vpop.permute.xlu0 %377  ;;  %vm445_vm2 = vcmp.eq.s32.totalorder %v381_v15, %v2754_v24  ;;  %1325 = vperm.xlu1 %2326, %v1234_v33  }
  0xbb   :  { %vm444_vm3 = vcmp.eq.s32.totalorder %v378_v16, %v2754_v24  ;;  %1322 = vperm.xlu0 %2325, %v1233_v14   ;;  %v1986_v19 = vsel %vm445_vm2, 1.0, %v2440_v32 }
  0xbc   :  { %v1985_v20 = vsel %vm444_vm3, 1.0, %v2440_v32 }
  0xbd   :  { %2168 = vmatprep.mubr.msk.f32.mxu0 %vm528_vm4, %v1985_v20  ;;  %v181_v25 = vpop.permute.xlu1 %180 }
  0xbe   :  { %2169 = vmatmul.mubr.msk.f32.gmra.mrb[14].mxu0 %vm528_vm4, %v1986_v19  ;;  %v178_v26 = vpop.permute.xlu0 %177  ;;  %vm245_vm5 = vcmp.eq.s32.totalorder %v181_v25, %v2754_v24  ;;  %1331 = vperm.xlu1 %2326, %v1236_v21  }
  0xbf   :  { %vm244_vm6 = vcmp.eq.s32.totalorder %v178_v26, %v2754_v24  ;;  %1328 = vperm.xlu0 %2325, %v1235_v22   ;;  %v1954_v27 = vsel %vm245_vm5, 1.0, %v2440_v32  ;;  %v1366_v26 = vshrl.u32 %v132_v18, 7 }
  0xc0   :  { %v1953_v30 = vsel %vm244_vm6, 1.0, %v2440_v32 }
  0xc1   :  { %2232 = vmatprep.mubr.msk.f32.mxu1 %vm850_vm15, %v1953_v30  ;;  %v387_v31 = vpop.permute.xlu1 %386 }
  0xc2   :  { %2233 = vmatmul.mubr.msk.f32.gmra.mrb[12].mxu1 %vm850_vm15, %v1954_v27  ;;  %v384_v2 = vpop.permute.xlu0 %383  ;;  %vm447_vm7 = vcmp.eq.s32.totalorder %v387_v31, %v2754_v24 }
  0xc3   :  { %vm446_vm8 = vcmp.eq.s32.totalorder %v384_v2, %v2754_v24  ;;  %v1988_v34 = vsel %vm447_vm7, 1.0, %v2440_v32 }
  0xc4   :  { %v1987_v35 = vsel %vm446_vm8, 1.0, %v2440_v32 }
  0xc5   :  { %2171 = vmatprep.mubr.msk.f32.mxu0 %vm528_vm4, %v1987_v35  ;;  %v187_v36 = vpop.permute.xlu1 %186  ;;  %v1371_v35 = vsub.s32 1, %v1366_v26 }
  0xc6   :  { %2172 = vmatmul.mubr.msk.f32.gmra.mrb[16].mxu0 %vm528_vm4, %v1988_v34  ;;  %v184_v37 = vpop.permute.xlu0 %183  ;;  %vm247_vm9 = vcmp.eq.s32.totalorder %v187_v36, %v2754_v24  ;;  %v1367_v34 = vsub.s32 0, %v1366_v26  ;;  %v1172_v36 = vld [vmem:[%s3641_s6] sm:$0x3] }
  0xc7   :  { %vm246_vm10 = vcmp.eq.s32.totalorder %v184_v37, %v2754_v24  ;;  %v1956_v39 = vsel %vm247_vm9, 1.0, %v2440_v32 }
  0xc8   :  { %v1955_v40 = vsel %vm246_vm10, 1.0, %v2440_v32 }
  0xc9   :  { %2235 = vmatprep.mubr.msk.f32.mxu1 %vm850_vm15, %v1955_v40  ;;  %v393_v41 = vpop.permute.xlu1 %392 }
  0xca   :  { %2236 = vmatmul.mubr.msk.f32.gmra.mrb[14].mxu1 %vm850_vm15, %v1956_v39  ;;  %v390_v42 = vpop.permute.xlu0 %389  ;;  %vm449_vm11 = vcmp.eq.s32.totalorder %v393_v41, %v2754_v24 }
  0xcb   :  { %vm448_vm12 = vcmp.eq.s32.totalorder %v390_v42, %v2754_v24  ;;  %v1990_v43 = vsel %vm449_vm11, 1.0, %v2440_v32  ;;  %v3077_v42 = vrot.slane %v1172_v36, %v1367_v34 }
  0xcc   :  { %v1989_v44 = vsel %vm448_vm12, 1.0, %v2440_v32 }
  0xcd   :  { %2174 = vmatprep.mubr.msk.f32.mxu0 %vm528_vm4, %v1989_v44  ;;  %v193_v45 = vpop.permute.xlu1 %192 }
  0xce   :  { %2175 = vmatmul.mubr.msk.f32.gmra.mrb[18].mxu0 %vm528_vm4, %v1990_v43  ;;  %v190_v46 = vpop.permute.xlu0 %189  ;;  %vm249_vm13 = vcmp.eq.s32.totalorder %v193_v45, %v2754_v24  ;;  %v3079_v43 = vrot.slane %v1172_v36, %v1371_v35 }
  0xcf   :  { %vm248_vm14 = vcmp.eq.s32.totalorder %v190_v46, %v2754_v24  ;;  %v1958_v47 = vsel %vm249_vm13, 1.0, %v2440_v32 }
  0xd0   :  { %v1957_v48 = vsel %vm248_vm14, 1.0, %v2440_v32 }
  0xd1   :  { %2238 = vmatprep.mubr.msk.f32.mxu1 %vm850_vm15, %v1957_v48  ;;  %v399_v49 = vpop.permute.xlu1 %398 }
  0xd2   :  { %2239 = vmatmul.mubr.msk.f32.gmra.mrb[16].mxu1 %vm850_vm15, %v1958_v47  ;;  %v396_v50 = vpop.permute.xlu0 %395  ;;  %vm451_vm0 = vcmp.eq.s32.totalorder %v399_v49, %v2754_v24 }
  0xd3   :  { %vm450_vm1 = vcmp.eq.s32.totalorder %v396_v50, %v2754_v24  ;;  %v1992_v51 = vsel %vm451_vm0, 1.0, %v2440_v32 }
  0xd4   :  { %v1991_v17 = vsel %vm450_vm1, 1.0, %v2440_v32 }
  0xd5   :  { %2177 = vmatprep.mubr.msk.f32.mxu0 %vm528_vm4, %v1991_v17  ;;  %v199_v52 = vpop.permute.xlu1 %198 }
  0xd6   :  { %2178 = vmatmul.mubr.msk.f32.gmra.mrb[20].mxu0 %vm528_vm4, %v1992_v51  ;;  %v196_v53 = vpop.permute.xlu0 %195  ;;  %vm251_vm2 = vcmp.eq.s32.totalorder %v199_v52, %v2754_v24 }
  0xd7   :  { %vm250_vm3 = vcmp.eq.s32.totalorder %v196_v53, %v2754_v24  ;;  %v1960_v54 = vsel %vm251_vm2, 1.0, %v2440_v32 }
  0xd8   :  { %v1959_v55 = vsel %vm250_vm3, 1.0, %v2440_v32 }
  0xd9   :  { %2241 = vmatprep.mubr.msk.f32.mxu1 %vm850_vm15, %v1959_v55  ;;  %v405_v56 = vpop.permute.xlu1 %404 }
  0xda   :  { %2242 = vmatmul.mubr.msk.f32.gmra.mrb[18].mxu1 %vm850_vm15, %v1960_v54  ;;  %v402_v57 = vpop.permute.xlu0 %401  ;;  %vm453_vm5 = vcmp.eq.s32.totalorder %v405_v56, %v2754_v24 }
  0xdb   :  { %vm452_vm6 = vcmp.eq.s32.totalorder %v402_v57, %v2754_v24  ;;  %v1994_v58 = vsel %vm453_vm5, 1.0, %v2440_v32 }
  0xdc   :  { %v1993_v59 = vsel %vm452_vm6, 1.0, %v2440_v32 }
  0xdd   :  { %2180 = vmatprep.mubr.msk.f32.mxu0 %vm528_vm4, %v1993_v59  ;;  %v205_v60 = vpop.permute.xlu1 %204 }
  0xde   :  { %2181 = vmatmul.mubr.msk.f32.gmra.mrb[22].mxu0 %vm528_vm4, %v1994_v58  ;;  %v202_v61 = vpop.permute.xlu0 %201  ;;  %vm253_vm7 = vcmp.eq.s32.totalorder %v205_v60, %v2754_v24 }
  0xdf   :  { %vm252_vm8 = vcmp.eq.s32.totalorder %v202_v61, %v2754_v24  ;;  %v1962_v62 = vsel %vm253_vm7, 1.0, %v2440_v32  ;;  %vm230_vm7 = vcmp.eq.s32.totalorder %v2758_v29, %v2754_v24 }
  0xe0   :  { %v1961_v23 = vsel %vm252_vm8, 1.0, %v2440_v32  ;;  %v1939_v37 = vsel %vm230_vm7, 1.0, %v2440_v32 }
  0xe1   :  { %2244 = vmatprep.mubr.msk.f32.mxu1 %vm850_vm15, %v1961_v23  ;;  %v411_v63 = vpop.permute.xlu1 %410 }
  0xe2   :  { %2245 = vmatmul.mubr.msk.f32.gmra.mrb[20].mxu1 %vm850_vm15, %v1962_v62  ;;  %v408_v0 = vpop.permute.xlu0 %407  ;;  %vm455_vm9 = vcmp.eq.s32.totalorder %v411_v63, %v2754_v24 }
  0xe3   :  { %vm454_vm10 = vcmp.eq.s32.totalorder %v408_v0, %v2754_v24  ;;  %v1996_v1 = vsel %vm455_vm9, 1.0, %v2440_v32 }
  0xe4   :  { %v1995_v3 = vsel %vm454_vm10, 1.0, %v2440_v32  ;;  %vm231_vm10 = vcmp.eq.s32.totalorder %v2771_v38, %v2754_v24 }
  0xe5   :  { %2183 = vmatprep.mubr.msk.f32.mxu0 %vm528_vm4, %v1995_v3  ;;  %v211_v4 = vpop.permute.xlu1 %210  ;;  %v1940_v38 = vsel %vm231_vm10, 1.0, %v2440_v32 }
  0xe6   :  { %2184 = vmatmul.mubr.msk.f32.gmra.mrb[24].mxu0 %vm528_vm4, %v1996_v1  ;;  %v208_v5 = vpop.permute.xlu0 %207  ;;  %vm255_vm11 = vcmp.eq.s32.totalorder %v211_v4, %v2754_v24 }
  0xe7   :  { %vm254_vm12 = vcmp.eq.s32.totalorder %v208_v5, %v2754_v24  ;;  %v1964_v6 = vsel %vm255_vm11, 1.0, %v2440_v32 }
  0xe8   :  { %v1963_v28 = vsel %vm254_vm12, 1.0, %v2440_v32 }
  0xe9   :  { %2247 = vmatprep.mubr.msk.f32.mxu1 %vm850_vm15, %v1963_v28  ;;  %v417_v7 = vpop.permute.xlu1 %416 }
  0xea   :  { %2248 = vmatmul.mubr.msk.f32.gmra.mrb[22].mxu1 %vm850_vm15, %v1964_v6  ;;  %v414_v8 = vpop.permute.xlu0 %413  ;;  %vm457_vm13 = vcmp.eq.s32.totalorder %v417_v7, %v2754_v24 }
  0xeb   :  { %vm456_vm14 = vcmp.eq.s32.totalorder %v414_v8, %v2754_v24  ;;  %v1998_v9 = vsel %vm457_vm13, 1.0, %v2440_v32 }
  0xec   :  { %v1997_v10 = vsel %vm456_vm14, 1.0, %v2440_v32 }
  0xed   :  { %2186 = vmatprep.mubr.msk.f32.mxu0 %vm528_vm4, %v1997_v10  ;;  %v217_v11 = vpop.permute.xlu1 %216 }
  0xee   :  { %2187 = vmatmul.mubr.msk.f32.gmra.mrb[26].mxu0 %vm528_vm4, %v1998_v9  ;;  %v214_v12 = vpop.permute.xlu0 %213  ;;  %vm257_vm0 = vcmp.eq.s32.totalorder %v217_v11, %v2754_v24 }
  0xef   :  { %vm256_vm1 = vcmp.eq.s32.totalorder %v214_v12, %v2754_v24  ;;  %v1966_v13 = vsel %vm257_vm0, 1.0, %v2440_v32 }
  0xf0   :  { %v1965_v33 = vsel %vm256_vm1, 1.0, %v2440_v32 }
  0xf1   :  { %2250 = vmatprep.mubr.msk.f32.mxu1 %vm850_vm15, %v1965_v33  ;;  %v423_v14 = vpop.permute.xlu1 %422 }
  0xf2   :  { %2251 = vmatmul.mubr.msk.f32.gmra.mrb[24].mxu1 %vm850_vm15, %v1966_v13  ;;  %v420_v15 = vpop.permute.xlu0 %419  ;;  %vm459_vm2 = vcmp.eq.s32.totalorder %v423_v14, %v2754_v24 }
  0xf3   :  { %vm458_vm3 = vcmp.eq.s32.totalorder %v420_v15, %v2754_v24  ;;  %v2000_v16 = vsel %vm459_vm2, 1.0, %v2440_v32 }
  0xf4   :  { %v1999_v19 = vsel %vm458_vm3, 1.0, %v2440_v32 }
  0xf5   :  { %2189 = vmatprep.mubr.msk.f32.mxu0 %vm528_vm4, %v1999_v19  ;;  %v223_v20 = vpop.permute.xlu1 %222 }
  0xf6   :  { %2190 = vmatmul.mubr.msk.f32.gmra.mrb[28].mxu0 %vm528_vm4, %v2000_v16  ;;  %v220_v21 = vpop.permute.xlu0 %219  ;;  %vm259_vm5 = vcmp.eq.s32.totalorder %v223_v20, %v2754_v24 }
  0xf7   :  { %vm258_vm6 = vcmp.eq.s32.totalorder %v220_v21, %v2754_v24  ;;  %v1968_v22 = vsel %vm259_vm5, 1.0, %v2440_v32 }
  0xf8   :  { %v1967_v25 = vsel %vm258_vm6, 1.0, %v2440_v32 }
  0xf9   :  { %2253 = vmatprep.mubr.msk.f32.mxu1 %vm850_vm15, %v1967_v25  ;;  %v429_v27 = vpop.permute.xlu1 %428 }
  0xfa   :  { %2254 = vmatmul.mubr.msk.f32.gmra.mrb[26].mxu1 %vm850_vm15, %v1968_v22  ;;  %v426_v30 = vpop.permute.xlu0 %425  ;;  %vm461_vm8 = vcmp.eq.s32.totalorder %v429_v27, %v2754_v24 }
  0xfb   :  { %vm460_vm9 = vcmp.eq.s32.totalorder %v426_v30, %v2754_v24  ;;  %v2002_v31 = vsel %vm461_vm8, 1.0, %v2440_v32 }
  0xfc   :  { %v2001_v2 = vsel %vm460_vm9, 1.0, %v2440_v32 }
  0xfd   :  { %2192 = vmatprep.mubr.msk.f32.mxu0 %vm528_vm4, %v2001_v2  ;;  %v229_v29 = vpop.permute.xlu1 %228 }
  0xfe   :  { %2193 = vmatmul.mubr.msk.f32.gmra.mrb[30].mxu0 %vm528_vm4, %v2002_v31  ;;  %v226_v39 = vpop.permute.xlu0 %225  ;;  %vm261_vm11 = vcmp.eq.s32.totalorder %v229_v29, %v2754_v24 }
  0xff   :  { %vm260_vm12 = vcmp.eq.s32.totalorder %v226_v39, %v2754_v24  ;;  %2211 = vmatprep.mubr.msk.f32.mxu0 %vm850_vm15, %v1939_v37  ;;  %v1970_v40 = vsel %vm261_vm11, 1.0, %v2440_v32 }
 0x100   :  { %v1969_v41 = vsel %vm260_vm12, 1.0, %v2440_v32 }
 0x101   :  { %2256 = vmatprep.mubr.msk.f32.mxu1 %vm850_vm15, %v1969_v41  ;;  %v1242_v44 = vpop.permute.xlu1 %1241 }
 0x102   :  { %2212 = vmatmul.mubr.msk.f32.vlgmr.msra.gmra.mrb[0].mxu0 %vm850_vm15, %v1940_v38  ;;  %2257 = vmatmul.mubr.msk.f32.gmra.mrb[28].mxu1 %vm850_vm15, %v1970_v40  ;;  %v1239_v24 = vpop.permute.xlu0 %1238  ;;  %vm1334_vm4 = vcmp.eq.s32.totalorder %v1242_v44, 1 }
 0x103   :  { %vm1333_vm13 = vcmp.eq.s32.totalorder %v1239_v24, 1  ;;  %v3087_v45 = vsel %vm1334_vm4, %v3077_v42, %v3079_v43 }
 0x104   :  { %v3091_v46 = vsel %vm1333_vm13, %v3077_v42, %v3079_v43 }
 0x105   :  { %v3093_v47 = vpop.permute.xlu1 %1247 }
 0x106   :  { %v3095_v32 = vpop.permute.xlu0 %1244  ;;  %vm1336_vm4 = vcmp.eq.s32.totalorder %v3093_v47, 1 }
 0x107   :  { %v1376_v36 = vsel %vm1336_vm4, %v3077_v42, %v3079_v43  ;;  %vm1335_vm13 = vcmp.eq.s32.totalorder %v3095_v32, 1  ;;  %vm1906_vm4 = vcmp.lt.s32.totalorder %v132_v18, 256 }
 0x108   :  { %v1375_v40 = vsel %vm1335_vm13, %v3077_v42, %v3079_v43 }
 0x109   :  { %v3097_v48 = vpop.permute.xlu1 %1253 }
 0x10a   :  { %v3099_v49 = vpop.permute.xlu0 %1250 }
 0x10d   :  { %v3101_v50 = vpop.permute.xlu1 %1259 }
 0x10e   :  { %v3103_v51 = vpop.permute.xlu0 %1256 }
 0x111   :  { %v3105_v17 = vpop.permute.xlu1 %1265 }
 0x112   :  { %v3107_v52 = vpop.permute.xlu0 %1262 }
 0x115   :  { %v3109_v53 = vpop.permute.xlu1 %1271 }
 0x116   :  { %v3111_v54 = vpop.permute.xlu0 %1268 }
 0x119   :  { %v3113_v55 = vpop.permute.xlu1 %1277 }
 0x11a   :  { %v3115_v56 = vpop.permute.xlu0 %1274 }
 0x11d   :  { %v3117_v57 = vpop.permute.xlu1 %1283 }
 0x11e   :  { %v3119_v58 = vpop.permute.xlu0 %1280 }
 0x121   :  { %v3121_v59 = vpop.permute.xlu1 %1289 }
 0x122   :  { %v3123_v60 = vpop.permute.xlu0 %1286 }
 0x125   :  { %v1296_v61 = vpop.permute.xlu1 %1295 }
 0x126   :  { %v1293_v62 = vpop.permute.xlu0 %1292  ;;  %vm1352_vm15 = vcmp.eq.s32.totalorder %v1296_v61, 1 }
 0x127   :  { %vm1351_vm14 = vcmp.eq.s32.totalorder %v1293_v62, 1  ;;  %v3127_v23 = vsel %vm1352_vm15, %v3077_v42, %v3079_v43  ;;  %vm1338_vm15 = vcmp.eq.s32.totalorder %v3097_v48, 1 }
 0x128   :  { %v3131_v63 = vsel %vm1351_vm14, %v3077_v42, %v3079_v43  ;;  %vm1337_vm14 = vcmp.eq.s32.totalorder %v3099_v49, 1  ;;  %v1378_v47 = vsel %vm1338_vm15, %v3077_v42, %v3079_v43 }
 0x129   :  { %v1302_v0 = vpop.permute.xlu1 %1301  ;;  %v1377_v62 = vsel %vm1337_vm14, %v3077_v42, %v3079_v43 }
 0x12a   :  { %v1299_v1 = vpop.permute.xlu0 %1298  ;;  %vm1354_vm0 = vcmp.eq.s32.totalorder %v1302_v0, 1 }
 0x12b   :  { %vm1353_vm1 = vcmp.eq.s32.totalorder %v1299_v1, 1  ;;  %v3135_v3 = vsel %vm1354_vm0, %v3077_v42, %v3079_v43  ;;  %vm1340_vm0 = vcmp.eq.s32.totalorder %v3101_v50, 1 }
 0x12c   :  { %v3139_v4 = vsel %vm1353_vm1, %v3077_v42, %v3079_v43  ;;  %vm1339_vm1 = vcmp.eq.s32.totalorder %v3103_v51, 1 }
 0x12d   :  { %v1308_v5 = vpop.permute.xlu1 %1307 }
 0x12e   :  { %v1305_v6 = vpop.permute.xlu0 %1304  ;;  %vm1356_vm2 = vcmp.eq.s32.totalorder %v1308_v5, 1 }
 0x12f   :  { %vm1355_vm3 = vcmp.eq.s32.totalorder %v1305_v6, 1  ;;  %v3143_v28 = vsel %vm1356_vm2, %v3077_v42, %v3079_v43  ;;  %vm1342_vm2 = vcmp.eq.s32.totalorder %v3105_v17, 1 }
 0x130   :  { %v3147_v7 = vsel %vm1355_vm3, %v3077_v42, %v3079_v43  ;;  %vm1341_vm3 = vcmp.eq.s32.totalorder %v3107_v52, 1 }
 0x131   :  { %v1314_v8 = vpop.permute.xlu1 %1313 }
 0x132   :  { %v1311_v9 = vpop.permute.xlu0 %1310  ;;  %vm1358_vm5 = vcmp.eq.s32.totalorder %v1314_v8, 1  ;;  %v1380_v8 = vsel %vm1340_vm0, %v3077_v42, %v3079_v43 }
 0x133   :  { %vm1357_vm6 = vcmp.eq.s32.totalorder %v1311_v9, 1  ;;  %v3151_v10 = vsel %vm1358_vm5, %v3077_v42, %v3079_v43  ;;  %vm1344_vm5 = vcmp.eq.s32.totalorder %v3109_v53, 1 }
 0x134   :  { %v3155_v11 = vsel %vm1357_vm6, %v3077_v42, %v3079_v43  ;;  %vm1343_vm6 = vcmp.eq.s32.totalorder %v3111_v54, 1 }
 0x135   :  { %v1320_v12 = vpop.permute.xlu1 %1319 }
 0x136   :  { %v1317_v13 = vpop.permute.xlu0 %1316  ;;  %vm1360_vm7 = vcmp.eq.s32.totalorder %v1320_v12, 1  ;;  %v1379_v12 = vsel %vm1339_vm1, %v3077_v42, %v3079_v43 }
 0x137   :  { %vm1359_vm8 = vcmp.eq.s32.totalorder %v1317_v13, 1  ;;  %v3159_v33 = vsel %vm1360_vm7, %v3077_v42, %v3079_v43  ;;  %vm1346_vm7 = vcmp.eq.s32.totalorder %v3113_v55, 1 }
 0x138   :  { %v3163_v14 = vsel %vm1359_vm8, %v3077_v42, %v3079_v43  ;;  %vm1345_vm8 = vcmp.eq.s32.totalorder %v3115_v56, 1 }
 0x139   :  { %v1326_v15 = vpop.permute.xlu1 %1325 }
 0x13a   :  { %v1323_v16 = vpop.permute.xlu0 %1322  ;;  %vm1362_vm9 = vcmp.eq.s32.totalorder %v1326_v15, 1 }
 0x13b   :  { %vm1361_vm10 = vcmp.eq.s32.totalorder %v1323_v16, 1  ;;  %v3167_v19 = vsel %vm1362_vm9, %v3077_v42, %v3079_v43  ;;  %vm1348_vm9 = vcmp.eq.s32.totalorder %v3117_v57, 1 }
 0x13c   :  { %v3171_v20 = vsel %vm1361_vm10, %v3077_v42, %v3079_v43  ;;  %vm1347_vm10 = vcmp.eq.s32.totalorder %v3119_v58, 1 }
 0x13d   :  { %v1332_v21 = vpop.permute.xlu1 %1331 }
 0x13e   :  { %v1329_v22 = vpop.permute.xlu0 %1328  ;;  %vm1364_vm11 = vcmp.eq.s32.totalorder %v1332_v21, 1 }
 0x13f   :  { %vm1363_vm12 = vcmp.eq.s32.totalorder %v1329_v22, 1  ;;  %v3175_v25 = vsel %vm1364_vm11, %v3077_v42, %v3079_v43  ;;  %vm1350_vm11 = vcmp.eq.s32.totalorder %v3121_v59, 1 }
 0x140   :  { %v3179_v26 = vsel %vm1363_vm12, %v3077_v42, %v3079_v43  ;;  %vm1349_vm12 = vcmp.eq.s32.totalorder %v3123_v60, 1 }
 0x161   :  { %v2152_v27 = vpop.f32.mrb[2].mxu0 }
 0x162   :  { %v701_v30 = vpop.f32.mrb[3].mxu0 }
 0x165   :  { %v2216_v31 = vpop.f32.mrb[0].mxu1 }
 0x166   :  { %v1029_v2 = vadd.f32 %v2216_v31, %v2152_v27  ;;  %v1023_v34 = vpop.f32.mrb[1].mxu1  ;;  %v1382_v27 = vsel %vm1342_vm2, %v3077_v42, %v3079_v43  ;;  %v1381_v31 = vsel %vm1341_vm3, %v3077_v42, %v3079_v43 }
 0x167   :  { %v1024_v35 = vadd.f32 %v1023_v34, %v701_v30 }
 0x168   :  { %v3185_v37 = vadd.f32 %v1376_v36, %v1029_v2 }
 0x169   :  { %v2155_v29 = vpop.f32.mrb[4].mxu0  ;;  %v3191_v41 = vadd.f32 %v1375_v40, %v1024_v35 }
 0x16a   :  { %1443 = vadd.xlane.f32.xlu0 %v3185_v37  ;;  %v711_v39 = vpop.f32.mrb[5].mxu0 }
 0x16d   :  { %v2219_v38 = vpop.f32.mrb[2].mxu1 }
 0x16e   :  { %v1039_v44 = vadd.f32 %v2219_v38, %v2155_v29  ;;  %v1033_v24 = vpop.f32.mrb[3].mxu1  ;;  %1441 = vadd.xlane.f32.xlu0 %v3191_v41  ;;  %v1383_v38 = vsel %vm1343_vm6, %v3077_v42, %v3079_v43 }
 0x16f   :  { %v1034_v32 = vadd.f32 %v1033_v24, %v711_v39  ;;  %v1384_v39 = vsel %vm1344_vm5, %v3077_v42, %v3079_v43 }
 0x170   :  { %v3197_v61 = vadd.f32 %v1378_v47, %v1039_v44 }
 0x171   :  { %v2158_v0 = vpop.f32.mrb[6].mxu0  ;;  %v3201_v48 = vadd.f32 %v1377_v62, %v1034_v32 }
 0x172   :  { %v721_v1 = vpop.f32.mrb[7].mxu0  ;;  %1447 = vadd.xlane.f32.xlu0 %v3197_v61 }
 0x173   :  { %1445 = vadd.xlane.f32.xlu1 %v3201_v48 }
 0x175   :  { %v2222_v49 = vpop.f32.mrb[4].mxu1 }
 0x176   :  { %v1049_v5 = vadd.f32 %v2222_v49, %v2158_v0  ;;  %v1043_v6 = vpop.f32.mrb[5].mxu1  ;;  %v1386_v0 = vsel %vm1346_vm7, %v3077_v42, %v3079_v43  ;;  %v1385_v49 = vsel %vm1345_vm8, %v3077_v42, %v3079_v43 }
 0x177   :  { %v1044_v9 = vadd.f32 %v1043_v6, %v721_v1 }
 0x178   :  { %v3211_v13 = vadd.f32 %v1380_v8, %v1049_v5 }
 0x179   :  { %v3213_v15 = vadd.f32 %v1379_v12, %v1044_v9  ;;  %v2161_v16 = vpop.f32.mrb[8].mxu0 }
 0x17a   :  { %v731_v21 = vpop.f32.mrb[9].mxu0  ;;  %1451 = vadd.xlane.f32.xlu0 %v3211_v13 }
 0x17b   :  { %1449 = vadd.xlane.f32.xlu1 %v3213_v15 }
 0x17d   :  { %v2225_v50 = vpop.f32.mrb[6].mxu1 }
 0x17e   :  { %v1059_v51 = vadd.f32 %v2225_v50, %v2161_v16  ;;  %v1053_v22 = vpop.f32.mrb[7].mxu1  ;;  %v1388_v16 = vsel %vm1348_vm9, %v3077_v42, %v3079_v43  ;;  %v1387_v50 = vsel %vm1347_vm10, %v3077_v42, %v3079_v43 }
 0x17f   :  { %v1054_v30 = vadd.f32 %v1053_v22, %v731_v21 }
 0x180   :  { %v3223_v2 = vadd.f32 %v1382_v27, %v1059_v51 }
 0x181   :  { %v3225_v34 = vadd.f32 %v1381_v31, %v1054_v30  ;;  %v2164_v35 = vpop.f32.mrb[10].mxu0 }
 0x182   :  { %v741_v36 = vpop.f32.mrb[11].mxu0  ;;  %1455 = vadd.xlane.f32.xlu0 %v3223_v2 }
 0x183   :  { %1453 = vadd.xlane.f32.xlu1 %v3225_v34 }
 0x185   :  { %v2228_v17 = vpop.f32.mrb[8].mxu1 }
 0x186   :  { %v1069_v52 = vadd.f32 %v2228_v17, %v2164_v35  ;;  %v1063_v29 = vpop.f32.mrb[9].mxu1  ;;  %v1390_v35 = vsel %vm1350_vm11, %v3077_v42, %v3079_v43  ;;  %v1389_v17 = vsel %vm1349_vm12, %v3077_v42, %v3079_v43 }
 0x187   :  { %v1064_v40 = vadd.f32 %v1063_v29, %v741_v36 }
 0x188   :  { %v3235_v44 = vadd.f32 %v1384_v39, %v1069_v52 }
 0x189   :  { %v3237_v24 = vadd.f32 %v1383_v38, %v1064_v40  ;;  %v2167_v47 = vpop.f32.mrb[12].mxu0 }
 0x18a   :  { %v751_v32 = vpop.f32.mrb[13].mxu0  ;;  %1459 = vadd.xlane.f32.xlu0 %v3235_v44 }
 0x18b   :  { %1457 = vadd.xlane.f32.xlu1 %v3237_v24 }
 0x18d   :  { %v2231_v53 = vpop.f32.mrb[10].mxu1 }
 0x18e   :  { %v1079_v54 = vadd.f32 %v2231_v53, %v2167_v47  ;;  %v1073_v62 = vpop.f32.mrb[11].mxu1 }
 0x18f   :  { %v1074_v1 = vadd.f32 %v1073_v62, %v751_v32 }
 0x190   :  { %v3247_v5 = vadd.f32 %v1386_v0, %v1079_v54 }
 0x191   :  { %v3249_v6 = vadd.f32 %v1385_v49, %v1074_v1  ;;  %v2170_v8 = vpop.f32.mrb[14].mxu0 }
 0x192   :  { %v761_v9 = vpop.f32.mrb[15].mxu0  ;;  %1463 = vadd.xlane.f32.xlu0 %v3247_v5 }
 0x193   :  { %1461 = vadd.xlane.f32.xlu1 %v3249_v6 }
 0x195   :  { %v2234_v55 = vpop.f32.mrb[12].mxu1 }
 0x196   :  { %v1089_v56 = vadd.f32 %v2234_v55, %v2170_v8  ;;  %v1083_v12 = vpop.f32.mrb[13].mxu1 }
 0x197   :  { %v1084_v21 = vadd.f32 %v1083_v12, %v761_v9 }
 0x198   :  { %v3259_v51 = vadd.f32 %v1388_v16, %v1089_v56 }
 0x199   :  { %v3261_v22 = vadd.f32 %v1387_v50, %v1084_v21  ;;  %v2173_v27 = vpop.f32.mrb[16].mxu0 }
 0x19a   :  { %v771_v30 = vpop.f32.mrb[17].mxu0  ;;  %1467 = vadd.xlane.f32.xlu0 %v3259_v51 }
 0x19b   :  { %1465 = vadd.xlane.f32.xlu1 %v3261_v22 }
 0x19d   :  { %v2237_v57 = vpop.f32.mrb[14].mxu1 }
 0x19e   :  { %v1099_v58 = vadd.f32 %v2237_v57, %v2173_v27  ;;  %v1093_v31 = vpop.f32.mrb[15].mxu1 }
 0x19f   :  { %v1094_v36 = vadd.f32 %v1093_v31, %v771_v30 }
 0x1a0   :  { %v3271_v52 = vadd.f32 %v1390_v35, %v1099_v58 }
 0x1a1   :  { %v3273_v29 = vadd.f32 %v1389_v17, %v1094_v36  ;;  %v2176_v39 = vpop.f32.mrb[18].mxu0 }
 0x1a2   :  { %v781_v40 = vpop.f32.mrb[19].mxu0  ;;  %1471 = vadd.xlane.f32.xlu0 %v3271_v52 }
 0x1a3   :  { %1469 = vadd.xlane.f32.xlu1 %v3273_v29 }
 0x1a5   :  { %v2240_v59 = vpop.f32.mrb[16].mxu1 }
 0x1a6   :  { %v1109_v60 = vadd.f32 %v2240_v59, %v2176_v39  ;;  %v1103_v38 = vpop.f32.mrb[17].mxu1 }
 0x1a7   :  { %v1104_v47 = vadd.f32 %v1103_v38, %v781_v40 }
 0x1a8   :  { %v3278_v32 = vadd.f32 %v3127_v23, %v1109_v60 }
 0x1a9   :  { %v3281_v53 = vadd.f32 %v3131_v63, %v1104_v47  ;;  %v2179_v42 = vpop.f32.mrb[20].mxu0 }
 0x1aa   :  { %v791_v43 = vpop.f32.mrb[21].mxu0  ;;  %1475 = vadd.xlane.f32.xlu0 %v3278_v32 }
 0x1ab   :  { %1473 = vadd.xlane.f32.xlu1 %v3281_v53 }
 0x1ad   :  { %v2243_v54 = vpop.f32.mrb[18].mxu1 }
 0x1ae   :  { %v1119_v62 = vadd.f32 %v2243_v54, %v2179_v42  ;;  %v1113_v0 = vpop.f32.mrb[19].mxu1 }
 0x1af   :  { %v1114_v1 = vadd.f32 %v1113_v0, %v791_v43 }
 0x1b0   :  { %v3286_v49 = vadd.f32 %v3135_v3, %v1119_v62 }
 0x1b1   :  { %v3289_v8 = vadd.f32 %v3139_v4, %v1114_v1  ;;  %v2182_v23 = vpop.f32.mrb[22].mxu0 }
 0x1b2   :  { %v801_v9 = vpop.f32.mrb[23].mxu0  ;;  %1479 = vadd.xlane.f32.xlu0 %v3286_v49 }
 0x1b3   :  { %1477 = vadd.xlane.f32.xlu1 %v3289_v8 }
 0x1b5   :  { %v2246_v63 = vpop.f32.mrb[20].mxu1 }
 0x1b6   :  { %v1129_v55 = vadd.f32 %v2246_v63, %v2182_v23  ;;  %v1123_v56 = vpop.f32.mrb[21].mxu1 }
 0x1b7   :  { %v1124_v12 = vadd.f32 %v1123_v56, %v801_v9 }
 0x1b8   :  { %v3294_v16 = vadd.f32 %v3143_v28, %v1129_v55 }
 0x1b9   :  { %v3297_v21 = vadd.f32 %v3147_v7, %v1124_v12  ;;  %v2185_v3 = vpop.f32.mrb[24].mxu0 }
 0x1ba   :  { %v811_v50 = vpop.f32.mrb[25].mxu0  ;;  %1483 = vadd.xlane.f32.xlu0 %v3294_v16 }
 0x1bb   :  { %1481 = vadd.xlane.f32.xlu1 %v3297_v21 }
 0x1bd   :  { %v2249_v4 = vpop.f32.mrb[22].mxu1 }
 0x1be   :  { %v1139_v27 = vadd.f32 %v2249_v4, %v2185_v3  ;;  %v1133_v30 = vpop.f32.mrb[23].mxu1 }
 0x1bf   :  { %v1134_v57 = vadd.f32 %v1133_v30, %v811_v50 }
 0x1c0   :  { %v3302_v58 = vadd.f32 %v3151_v10, %v1139_v27 }
 0x1c1   :  { %v3305_v31 = vadd.f32 %v3155_v11, %v1134_v57  ;;  %v2188_v28 = vpop.f32.mrb[26].mxu0 }
 0x1c2   :  { %v821_v35 = vpop.f32.mrb[27].mxu0  ;;  %1487 = vadd.xlane.f32.xlu0 %v3302_v58 }
 0x1c3   :  { %1485 = vadd.xlane.f32.xlu1 %v3305_v31 }
 0x1c5   :  { %v2252_v7 = vpop.f32.mrb[24].mxu1 }
 0x1c6   :  { %v1149_v36 = vadd.f32 %v2252_v7, %v2188_v28  ;;  %v1143_v17 = vpop.f32.mrb[25].mxu1 }
 0x1c7   :  { %v1144_v39 = vadd.f32 %v1143_v17, %v821_v35 }
 0x1c8   :  { %v3310_v40 = vadd.f32 %v3159_v33, %v1149_v36 }
 0x1c9   :  { %v3313_v59 = vadd.f32 %v3163_v14, %v1144_v39  ;;  %v2191_v10 = vpop.f32.mrb[28].mxu0 }
 0x1ca   :  { %v831_v60 = vpop.f32.mrb[29].mxu0  ;;  %1491 = vadd.xlane.f32.xlu0 %v3310_v40 }
 0x1cb   :  { %1489 = vadd.xlane.f32.xlu1 %v3313_v59 }
 0x1cd   :  { %v2255_v11 = vpop.f32.mrb[26].mxu1 }
 0x1ce   :  { %v1159_v38 = vadd.f32 %v2255_v11, %v2191_v10  ;;  %v1153_v47 = vpop.f32.mrb[27].mxu1 }
 0x1cf   :  { %v1154_v42 = vadd.f32 %v1153_v47, %v831_v60 }
 0x1d0   :  { %v3318_v43 = vadd.f32 %v3167_v19, %v1159_v38 }
 0x1d1   :  { %v3321_v54 = vadd.f32 %v3171_v20, %v1154_v42  ;;  %v2194_v33 = vpop.f32.mrb[30].mxu0 }
 0x1d2   :  { %v841_v62 = vpop.f32.mrb[31].mxu0  ;;  %1495 = vadd.xlane.f32.xlu0 %v3318_v43 }
 0x1d3   :  { %1493 = vadd.xlane.f32.xlu1 %v3321_v54 }
 0x1d5   :  { %v2213_v14 = vpop.f32.mrb[0].mxu0  ;;  %v2258_v0 = vpop.f32.mrb[28].mxu1 }
 0x1d6   :  { %v3326_v1 = vadd.f32 %v2213_v14, %v3087_v45  ;;  %v1169_v23 = vadd.f32 %v2258_v0, %v2194_v33  ;;  %v1013_v9 = vpop.f32.mrb[1].mxu0  ;;  %v1163_v63 = vpop.f32.mrb[29].mxu1 }
 0x1d7   :  { %v3329_v19 = vadd.f32 %v3091_v46, %v1013_v9  ;;  %v1164_v55 = vadd.f32 %v1163_v63, %v841_v62 }
 0x1d8   :  { %v3332_v20 = vadd.f32 %v3175_v25, %v1169_v23  ;;  %1439 = vadd.xlane.f32.xlu1 %v3326_v1 }
 0x1d9   :  { %v3336_v56 = vadd.f32 %v3179_v26, %v1164_v55  ;;  %1437 = vadd.xlane.f32.xlu0 %v3329_v19 }
 0x1dc   :  { %1497 = vadd.xlane.f32.xlu1 %v3336_v56 }
 0x1dd   :  { %1499 = vadd.xlane.f32.xlu0 %v3332_v20 }
 0x1f7   :  { %v1444_v45 = vpop.xlane.xlu0 %1443 }
 0x1f8   :  { %v1505_v12 = vmul.f32 0.0078125, %v1444_v45 }
 0x1fa   :  { %v3342_v46 = vsub.f32 %v3185_v37, %v1505_v12 }
 0x1fb   :  { %v1442_v3 = vpop.xlane.xlu0 %1441 }
 0x1fc   :  { %v1504_v50 = vmul.f32 0.0078125, %v1442_v3  ;;  %v1569_v25 = vmul.f32 %v3342_v46, %v3342_v46 }
 0x1fe   :  { %v3347_v4 = vsub.f32 %v3191_v41, %v1504_v50  ;;  %1604 = vadd.xlane.f32.xlu0 %v1569_v25 }
 0x1ff   :  { %v1448_v26 = vpop.xlane.xlu0 %1447 }
 0x200   :  { %v1507_v27 = vmul.f32 0.0078125, %v1448_v26  ;;  %v1446_v30 = vpop.xlane.xlu1 %1445  ;;  %v1568_v57 = vmul.f32 %v3347_v4, %v3347_v4 }
 0x201   :  { %v1506_v28 = vmul.f32 0.0078125, %v1446_v30 }
 0x202   :  { %v3352_v35 = vsub.f32 %v3197_v61, %v1507_v27  ;;  %1602 = vadd.xlane.f32.xlu1 %v1568_v57 }
 0x203   :  { %v3355_v37 = vsub.f32 %v3201_v48, %v1506_v28 }
 0x204   :  { %v1571_v7 = vmul.f32 %v3352_v35, %v3352_v35 }
 0x205   :  { %v1570_v41 = vmul.f32 %v3355_v37, %v3355_v37 }
 0x206   :  { %1608 = vadd.xlane.f32.xlu0 %v1571_v7 }
 0x207   :  { %1606 = vadd.xlane.f32.xlu1 %v1570_v41  ;;  %v1452_v36 = vpop.xlane.xlu0 %1451 }
 0x208   :  { %v1509_v17 = vmul.f32 0.0078125, %v1452_v36  ;;  %v1450_v39 = vpop.xlane.xlu1 %1449 }
 0x209   :  { %v1508_v10 = vmul.f32 0.0078125, %v1450_v39 }
 0x20a   :  { %v3362_v60 = vsub.f32 %v3211_v13, %v1509_v17 }
 0x20b   :  { %v3365_v61 = vsub.f32 %v3213_v15, %v1508_v10 }
 0x20c   :  { %v1573_v48 = vmul.f32 %v3362_v60, %v3362_v60 }
 0x20d   :  { %v1572_v11 = vmul.f32 %v3365_v61, %v3365_v61 }
 0x20e   :  { %1612 = vadd.xlane.f32.xlu0 %v1573_v48 }
 0x20f   :  { %1610 = vadd.xlane.f32.xlu1 %v1572_v11  ;;  %v1456_v38 = vpop.xlane.xlu0 %1455 }
 0x210   :  { %v1511_v47 = vmul.f32 0.0078125, %v1456_v38  ;;  %v1454_v42 = vpop.xlane.xlu1 %1453 }
 0x211   :  { %v1510_v33 = vmul.f32 0.0078125, %v1454_v42 }
 0x212   :  { %v3372_v62 = vsub.f32 %v3223_v2, %v1511_v47 }
 0x213   :  { %v3375_v13 = vsub.f32 %v3225_v34, %v1510_v33 }
 0x214   :  { %v1575_v15 = vmul.f32 %v3372_v62, %v3372_v62 }
 0x215   :  { %v1574_v14 = vmul.f32 %v3375_v13, %v3375_v13 }
 0x216   :  { %1616 = vadd.xlane.f32.xlu0 %v1575_v15 }
 0x217   :  { %1614 = vadd.xlane.f32.xlu1 %v1574_v14  ;;  %v1460_v0 = vpop.xlane.xlu0 %1459 }
 0x218   :  { %v1513_v23 = vmul.f32 0.0078125, %v1460_v0  ;;  %v1458_v9 = vpop.xlane.xlu1 %1457 }
 0x219   :  { %v1512_v63 = vmul.f32 0.0078125, %v1458_v9 }
 0x21a   :  { %v3382_v55 = vsub.f32 %v3235_v44, %v1513_v23 }
 0x21b   :  { %v3385_v2 = vsub.f32 %v3237_v24, %v1512_v63 }
 0x21c   :  { %v1577_v34 = vmul.f32 %v3382_v55, %v3382_v55 }
 0x21d   :  { %v1576_v45 = vmul.f32 %v3385_v2, %v3385_v2 }
 0x21e   :  { %1620 = vadd.xlane.f32.xlu0 %v1577_v34 }
 0x21f   :  { %1618 = vadd.xlane.f32.xlu1 %v1576_v45  ;;  %v1464_v12 = vpop.xlane.xlu0 %1463 }
 0x220   :  { %v1515_v3 = vmul.f32 0.0078125, %v1464_v12  ;;  %v1462_v50 = vpop.xlane.xlu1 %1461 }
 0x221   :  { %v1514_v25 = vmul.f32 0.0078125, %v1462_v50 }
 0x222   :  { %v3392_v26 = vsub.f32 %v3247_v5, %v1515_v3 }
 0x223   :  { %v3395_v44 = vsub.f32 %v3249_v6, %v1514_v25 }
 0x224   :  { %v1579_v24 = vmul.f32 %v3392_v26, %v3392_v26 }
 0x225   :  { %v1578_v27 = vmul.f32 %v3395_v44, %v3395_v44 }
 0x226   :  { %1624 = vadd.xlane.f32.xlu0 %v1579_v24 }
 0x227   :  { %1622 = vadd.xlane.f32.xlu1 %v1578_v27  ;;  %v1468_v30 = vpop.xlane.xlu0 %1467 }
 0x228   :  { %v1517_v57 = vmul.f32 0.0078125, %v1468_v30  ;;  %v1466_v28 = vpop.xlane.xlu1 %1465 }
 0x229   :  { %v1516_v7 = vmul.f32 0.0078125, %v1466_v28 }
 0x22a   :  { %v3402_v41 = vsub.f32 %v3259_v51, %v1517_v57 }
 0x22b   :  { %v3405_v5 = vsub.f32 %v3261_v22, %v1516_v7 }
 0x22c   :  { %v1581_v6 = vmul.f32 %v3402_v41, %v3402_v41 }
 0x22d   :  { %v1580_v36 = vmul.f32 %v3405_v5, %v3405_v5 }
 0x22e   :  { %1628 = vadd.xlane.f32.xlu0 %v1581_v6 }
 0x22f   :  { %1626 = vadd.xlane.f32.xlu1 %v1580_v36  ;;  %v1472_v17 = vpop.xlane.xlu0 %1471 }
 0x230   :  { %v1519_v39 = vmul.f32 0.0078125, %v1472_v17  ;;  %v1470_v10 = vpop.xlane.xlu1 %1469 }
 0x231   :  { %v1518_v48 = vmul.f32 0.0078125, %v1470_v10 }
 0x232   :  { %v3412_v11 = vsub.f32 %v3271_v52, %v1519_v39 }
 0x233   :  { %v3415_v51 = vsub.f32 %v3273_v29, %v1518_v48 }
 0x234   :  { %v1583_v22 = vmul.f32 %v3412_v11, %v3412_v11 }
 0x235   :  { %v1582_v38 = vmul.f32 %v3415_v51, %v3415_v51 }
 0x236   :  { %1632 = vadd.xlane.f32.xlu0 %v1583_v22 }
 0x237   :  { %1630 = vadd.xlane.f32.xlu1 %v1582_v38  ;;  %v1476_v47 = vpop.xlane.xlu0 %1475 }
 0x238   :  { %v1521_v42 = vmul.f32 0.0078125, %v1476_v47  ;;  %v1474_v33 = vpop.xlane.xlu1 %1473 }
 0x239   :  { %v1520_v15 = vmul.f32 0.0078125, %v1474_v33 }
 0x23a   :  { %v3422_v14 = vsub.f32 %v3278_v32, %v1521_v42 }
 0x23b   :  { %v3425_v52 = vsub.f32 %v3281_v53, %v1520_v15 }
 0x23c   :  { %v1585_v29 = vmul.f32 %v3422_v14, %v3422_v14 }
 0x23d   :  { %v1584_v0 = vmul.f32 %v3425_v52, %v3425_v52 }
 0x23e   :  { %1636 = vadd.xlane.f32.xlu0 %v1585_v29 }
 0x23f   :  { %1634 = vadd.xlane.f32.xlu1 %v1584_v0  ;;  %v1480_v23 = vpop.xlane.xlu0 %1479 }
 0x240   :  { %v1523_v9 = vmul.f32 0.0078125, %v1480_v23  ;;  %v1478_v63 = vpop.xlane.xlu1 %1477 }
 0x241   :  { %v1522_v34 = vmul.f32 0.0078125, %v1478_v63 }
 0x242   :  { %v3432_v45 = vsub.f32 %v3286_v49, %v1523_v9 }
 0x243   :  { %v3435_v32 = vsub.f32 %v3289_v8, %v1522_v34 }
 0x244   :  { %v1587_v53 = vmul.f32 %v3432_v45, %v3432_v45 }
 0x245   :  { %v1586_v12 = vmul.f32 %v3435_v32, %v3435_v32 }
 0x246   :  { %1640 = vadd.xlane.f32.xlu0 %v1587_v53 }
 0x247   :  { %1638 = vadd.xlane.f32.xlu1 %v1586_v12  ;;  %v1484_v3 = vpop.xlane.xlu0 %1483 }
 0x248   :  { %v1525_v50 = vmul.f32 0.0078125, %v1484_v3  ;;  %v1482_v25 = vpop.xlane.xlu1 %1481 }
 0x249   :  { %v1524_v24 = vmul.f32 0.0078125, %v1482_v25 }
 0x24a   :  { %v3442_v27 = vsub.f32 %v3294_v16, %v1525_v50 }
 0x24b   :  { %v3445_v49 = vsub.f32 %v3297_v21, %v1524_v24 }
 0x24c   :  { %v1589_v8 = vmul.f32 %v3442_v27, %v3442_v27 }
 0x24d   :  { %v1588_v30 = vmul.f32 %v3445_v49, %v3445_v49 }
 0x24e   :  { %1644 = vadd.xlane.f32.xlu0 %v1589_v8 }
 0x24f   :  { %1642 = vadd.xlane.f32.xlu1 %v1588_v30  ;;  %v1488_v57 = vpop.xlane.xlu0 %1487 }
 0x250   :  { %v1527_v28 = vmul.f32 0.0078125, %v1488_v57  ;;  %v1486_v7 = vpop.xlane.xlu1 %1485 }
 0x251   :  { %v1526_v6 = vmul.f32 0.0078125, %v1486_v7 }
 0x252   :  { %v3452_v36 = vsub.f32 %v3302_v58, %v1527_v28 }
 0x253   :  { %v3455_v16 = vsub.f32 %v3305_v31, %v1526_v6 }
 0x254   :  { %v1591_v21 = vmul.f32 %v3452_v36, %v3452_v36 }
 0x255   :  { %v1590_v17 = vmul.f32 %v3455_v16, %v3455_v16 }
 0x256   :  { %1648 = vadd.xlane.f32.xlu0 %v1591_v21 }
 0x257   :  { %1646 = vadd.xlane.f32.xlu1 %v1590_v17  ;;  %v1492_v39 = vpop.xlane.xlu0 %1491 }
 0x258   :  { %v1529_v10 = vmul.f32 0.0078125, %v1492_v39  ;;  %v1490_v48 = vpop.xlane.xlu1 %1489 }
 0x259   :  { %v1528_v22 = vmul.f32 0.0078125, %v1490_v48 }
 0x25a   :  { %v3462_v38 = vsub.f32 %v3310_v40, %v1529_v10 }
 0x25b   :  { %v3465_v58 = vsub.f32 %v3313_v59, %v1528_v22 }
 0x25c   :  { %v1593_v31 = vmul.f32 %v3462_v38, %v3462_v38 }
 0x25d   :  { %v1592_v47 = vmul.f32 %v3465_v58, %v3465_v58 }
 0x25e   :  { %1652 = vadd.xlane.f32.xlu0 %v1593_v31 }
 0x25f   :  { %1650 = vadd.xlane.f32.xlu1 %v1592_v47  ;;  %v1496_v42 = vpop.xlane.xlu0 %1495 }
 0x260   :  { %v1531_v33 = vmul.f32 0.0078125, %v1496_v42  ;;  %v1494_v15 = vpop.xlane.xlu1 %1493 }
 0x261   :  { %v1530_v29 = vmul.f32 0.0078125, %v1494_v15 }
 0x262   :  { %v3472_v0 = vsub.f32 %v3318_v43, %v1531_v33 }
 0x263   :  { %v3475_v40 = vsub.f32 %v3321_v54, %v1530_v29 }
 0x264   :  { %v1595_v59 = vmul.f32 %v3472_v0, %v3472_v0 }
 0x265   :  { %v1440_v23 = vpop.xlane.xlu1 %1439  ;;  %v1594_v9 = vmul.f32 %v3475_v40, %v3475_v40 }
 0x266   :  { %v1503_v63 = vmul.f32 0.0078125, %v1440_v23  ;;  %1656 = vadd.xlane.f32.xlu0 %v1595_v59  ;;  %v1438_v34 = vpop.xlane.xlu0 %1437 }
 0x267   :  { %v1502_v53 = vmul.f32 0.0078125, %v1438_v34  ;;  %1654 = vadd.xlane.f32.xlu1 %v1594_v9 }
 0x268   :  { %v3482_v12 = vsub.f32 %v3326_v1, %v1503_v63 }
 0x269   :  { %v3485_v43 = vsub.f32 %v3329_v19, %v1502_v53  ;;  %v1498_v54 = vpop.xlane.xlu1 %1497 }
 0x26a   :  { %v1532_v3 = vmul.f32 0.0078125, %v1498_v54  ;;  %v1500_v50 = vpop.xlane.xlu0 %1499  ;;  %v1567_v25 = vmul.f32 %v3482_v12, %v3482_v12 }
 0x26b   :  { %v1533_v24 = vmul.f32 0.0078125, %v1500_v50  ;;  %v1566_v8 = vmul.f32 %v3485_v43, %v3485_v43 }
 0x26c   :  { %v3492_v30 = vsub.f32 %v3336_v56, %v1532_v3  ;;  %1600 = vadd.xlane.f32.xlu0 %v1567_v25  ;;  %v1900_v56 = vld [vmem:[%s3638_s3] sm:$0x3]  ;;  %s2391_s3 = scalar_lea.vmem %s1928_s27, 32 }
 0x26d   :  { %v3495_v1 = vsub.f32 %v3332_v20, %v1533_v24  ;;  %1598 = vadd.xlane.f32.xlu1 %v1566_v8  ;;  %v1901_v17 = vcvt.s32.f32 %v1900_v56  ;;  %p2392_p0 = scmp.ne.s32.totalorder %s1928_s27, %s2391_s3  ;;  %p2397_p2 = scmp.lt.s32.totalorder %s2391_s3, %s2391_s3 }
 0x26e   :  { %v1596_v19 = vmul.f32 %v3492_v30, %v3492_v30 }
 0x26f   :  { %v1597_v57 = vmul.f32 %v3495_v1, %v3495_v1  ;;  %v1902_v39 = vsub.f32 1.0, %v1901_v17  ;;  %p2398_p3 = por %p2397_p2, %p2396_p1 }
 0x271   :  { %1658 = vadd.xlane.f32.xlu1 %v1596_v19  ;;  %1660 = vadd.xlane.f32.xlu0 %v1597_v57  ;;  %v1903_v22 = vmul.f32 -10000.0, %v1902_v39  ;;  %p2399_p4 = pnand %p2398_p3, %p2392_p0 }
 0x273   :  { %1908 = vst.msk [vmem:[#allocation4] sm:$0x3] %vm1906_vm4, %v1903_v22 }
 0x28b   :  { %v1605_v28 = vpop.xlane.xlu0 %1604 }
 0x28c   :  { %v1665_v7 = vmul.f32 0.0078125, %v1605_v28 }
 0x28e   :  { %v1697_v6 = vadd.f32 1e-12, %v1665_v7 }
 0x28f   :  { %v1603_v21 = vpop.xlane.xlu1 %1602 }
 0x290   :  { %2327 = vrsqrt.f32 %v1697_v6  ;;  %v1664_v20 = vmul.f32 0.0078125, %v1603_v21 }
 0x292   :  { %v1696_v10 = vadd.f32 1e-12, %v1664_v20 }
 0x293   :  { %v1609_v48 = vpop.xlane.xlu0 %1608 }
 0x294   :  { %2329 = vrsqrt.f32 %v1696_v10  ;;  %v1667_v31 = vmul.f32 0.0078125, %v1609_v48  ;;  %v1607_v47 = vpop.xlane.xlu1 %1606 }
 0x295   :  { %v1666_v42 = vmul.f32 0.0078125, %v1607_v47 }
 0x296   :  { %v1699_v33 = vadd.f32 1e-12, %v1667_v31 }
 0x297   :  { %v1698_v15 = vadd.f32 1e-12, %v1666_v42 }
 0x298   :  { %2402 = shalt.err (!%p2399_p4)
}
 0x299   :  { %s2403_s29 = scalar_lea.hbm %s3645_s10, 32 }
 0x29a   :  { %p2404_p5 = scmp.ne.s32.totalorder %s3645_s10, %s2403_s29  ;;  %p2407_p6 = scmp.lt.u32.totalorder %s2403_s29, %s3645_s10 }
 0x29c   :  { %p2409_p7 = pnand %p2407_p6, %p2404_p5 }
 0x29e   :  { %2412 = shalt.err (!%p2409_p7)
}
 0x29f   :  { %1930 = dma.vmem_to_hbm [thread:$0]  %s1928_s27, 32, %s3645_s10, [#allocation5]   ;;  %2331 = vrsqrt.f32 %v1699_v33  ;;  %v2328_v18 = vpop.eup %2327  ;;  %v3520_v29 = vld [vmem:[%s3642_s7] ss:$0 sm:$0xff]  ;;  %v1613_v23 = vpop.xlane.xlu0 %1612 }
 0x2a0   :  { %2333 = vrsqrt.f32 %v1698_v15  ;;  %v1761_v59 = vmul.f32 %v2328_v18, %v3342_v46  ;;  %v3526_v9 = vld [vmem:[%s3643_s8] ss:$0 sm:$0xff]  ;;  %v1669_v63 = vmul.f32 0.0078125, %v1613_v23  ;;  %v1611_v34 = vpop.xlane.xlu1 %1610  ;;  %v2330_v3 = vpop.eup %2329  ;;  %s2442_s7 = smov [#allocation2]  }
 0x2a1   :  { %v1668_v54 = vmul.f32 0.0078125, %v1611_v34  ;;  %v1760_v24 = vmul.f32 %v2330_v3, %v3347_v4  ;;  %s1914_s8 = sshll.u32 %s2442_s7, 4  ;;  %s1915_s8 = int_to_ptr.vmem [resolvable:$true] %s1914_s8 }
 0x2a2   :  { %v1800_v53 = vmul.f32 %v3520_v29, %v1761_v59  ;;  %v1701_v50 = vadd.f32 1e-12, %v1669_v63  ;;  %s2413_s10 = scalar_lea.vmem %s1915_s8, 4096  ;;  %p2418_p9 = scmp.lt.s32.totalorder %s1915_s8, %s1915_s8 }
 0x2a3   :  { %v1700_v8 = vadd.f32 1e-12, %v1668_v54  ;;  %v1799_v46 = vmul.f32 %v3520_v29, %v1760_v24  ;;  %v1617_v6 = vpop.xlane.xlu0 %1616  ;;  %p2414_p8 = scmp.ne.s32.totalorder %s1915_s8, %s2413_s10  ;;  %p2419_p10 = scmp.lt.s32.totalorder %s2413_s10, %s2413_s10 }
 0x2a4   :  { %v1839_v25 = vadd.f32 %v3526_v9, %v1800_v53  ;;  %2335 = vrsqrt.f32 %v1701_v50  ;;  %v1671_v21 = vmul.f32 0.0078125, %v1617_v6  ;;  %v1615_v17 = vpop.xlane.xlu1 %1614 }
 0x2a5   :  { %2337 = vrsqrt.f32 %v1700_v8  ;;  %v1838_v28 = vadd.f32 %v3526_v9, %v1799_v46  ;;  %v1670_v20 = vmul.f32 0.0078125, %v1615_v17  ;;  %p2420_p11 = por %p2419_p10, %p2418_p9 }
 0x2a6   :  { %1871 = vst [vmem:[#allocation2 + $0x18] sm:$0xff] %v1839_v25  ;;  %v1703_v10 = vadd.f32 1e-12, %v1671_v21 }
 0x2a7   :  { %1870 = vst [vmem:[#allocation2 + $0x10] sm:$0xff] %v1838_v28  ;;  %v1702_v22 = vadd.f32 1e-12, %v1670_v20  ;;  %p2421_p12 = pnand %p2420_p11, %p2414_p8 }
 0x2a8   :  { %2339 = vrsqrt.f32 %v1703_v10 }
 0x2a9   :  { %v2332_v19 = vpop.eup %2331  ;;  %2341 = vrsqrt.f32 %v1702_v22 }
 0x2aa   :  { %v2334_v57 = vpop.eup %2333  ;;  %v1763_v7 = vmul.f32 %v2332_v19, %v3352_v35 }
 0x2ab   :  { %v1762_v56 = vmul.f32 %v2334_v57, %v3355_v37  ;;  %v1621_v42 = vpop.xlane.xlu0 %1620 }
 0x2ac   :  { %v1802_v4 = vmul.f32 %v3520_v29, %v1763_v7  ;;  %v1673_v15 = vmul.f32 0.0078125, %v1621_v42  ;;  %v1619_v18 = vpop.xlane.xlu1 %1618 }
 0x2ad   :  { %v1801_v39 = vmul.f32 %v3520_v29, %v1762_v56  ;;  %v1672_v23 = vmul.f32 0.0078125, %v1619_v18 }
 0x2ae   :  { %v1841_v48 = vadd.f32 %v3526_v9, %v1802_v4  ;;  %v2336_v35 = vpop.eup %2335  ;;  %v1705_v34 = vadd.f32 1e-12, %v1673_v15 }
 0x2af   :  { %v1840_v31 = vadd.f32 %v3526_v9, %v1801_v39  ;;  %v2338_v37 = vpop.eup %2337  ;;  %v1765_v47 = vmul.f32 %v2336_v35, %v3362_v60  ;;  %v1704_v54 = vadd.f32 1e-12, %v1672_v23 }
 0x2b0   :  { %1873 = vst [vmem:[#allocation2 + $0x28] sm:$0xff] %v1841_v48  ;;  %v1764_v33 = vmul.f32 %v2338_v37, %v3365_v61  ;;  %2343 = vrsqrt.f32 %v1705_v34 }
 0x2b1   :  { %1872 = vst [vmem:[#allocation2 + $0x20] sm:$0xff] %v1840_v31  ;;  %v1804_v59 = vmul.f32 %v3520_v29, %v1765_v47  ;;  %2345 = vrsqrt.f32 %v1704_v54 }
 0x2b2   :  { %v1803_v63 = vmul.f32 %v3520_v29, %v1764_v33  ;;  %v2340_v60 = vpop.eup %2339 }
 0x2b3   :  { %v1843_v53 = vadd.f32 %v3526_v9, %v1804_v59  ;;  %v2342_v50 = vpop.eup %2341  ;;  %v1767_v61 = vmul.f32 %v2340_v60, %v3372_v62  ;;  %v1625_v25 = vpop.xlane.xlu0 %1624 }
 0x2b4   :  { %v1842_v3 = vadd.f32 %v3526_v9, %v1803_v63  ;;  %v1766_v24 = vmul.f32 %v2342_v50, %v3375_v13  ;;  %v1675_v8 = vmul.f32 0.0078125, %v1625_v25  ;;  %v1623_v46 = vpop.xlane.xlu1 %1622 }
 0x2b5   :  { %1875 = vst [vmem:[#allocation2 + $0x38] sm:$0xff] %v1843_v53  ;;  %v1806_v19 = vmul.f32 %v3520_v29, %v1767_v61  ;;  %v1674_v57 = vmul.f32 0.0078125, %v1623_v46 }
 0x2b6   :  { %1874 = vst [vmem:[#allocation2 + $0x30] sm:$0xff] %v1842_v3  ;;  %v1805_v28 = vmul.f32 %v3520_v29, %v1766_v24  ;;  %v1707_v7 = vadd.f32 1e-12, %v1675_v8 }
 0x2b7   :  { %v1845_v6 = vadd.f32 %v3526_v9, %v1806_v19  ;;  %v1706_v56 = vadd.f32 1e-12, %v1674_v57 }
 0x2b8   :  { %v1844_v21 = vadd.f32 %v3526_v9, %v1805_v28  ;;  %2347 = vrsqrt.f32 %v1707_v7 }
 0x2b9   :  { %1877 = vst [vmem:[#allocation2 + $0x48] sm:$0xff] %v1845_v6  ;;  %2349 = vrsqrt.f32 %v1706_v56 }
 0x2ba   :  { %v2344_v62 = vpop.eup %2343  ;;  %1876 = vst [vmem:[#allocation2 + $0x40] sm:$0xff] %v1844_v21 }
 0x2bb   :  { %v2346_v17 = vpop.eup %2345  ;;  %v1769_v13 = vmul.f32 %v2344_v62, %v3382_v55  ;;  %v1629_v4 = vpop.xlane.xlu0 %1628 }
 0x2bc   :  { %v1768_v20 = vmul.f32 %v2346_v17, %v3385_v2  ;;  %v1677_v39 = vmul.f32 0.0078125, %v1629_v4  ;;  %v1627_v10 = vpop.xlane.xlu1 %1626 }
 0x2bd   :  { %v1808_v48 = vmul.f32 %v3520_v29, %v1769_v13  ;;  %v1676_v22 = vmul.f32 0.0078125, %v1627_v10 }
 0x2be   :  { %v1807_v31 = vmul.f32 %v3520_v29, %v1768_v20  ;;  %v1709_v35 = vadd.f32 1e-12, %v1677_v39 }
 0x2bf   :  { %v1847_v37 = vadd.f32 %v3526_v9, %v1808_v48  ;;  %v1708_v47 = vadd.f32 1e-12, %v1676_v22 }
 0x2c0   :  { %v1846_v42 = vadd.f32 %v3526_v9, %v1807_v31  ;;  %2351 = vrsqrt.f32 %v1709_v35 }
 0x2c1   :  { %1879 = vst [vmem:[#allocation2 + $0x58] sm:$0xff] %v1847_v37  ;;  %2353 = vrsqrt.f32 %v1708_v47 }
 0x2c2   :  { %v2348_v55 = vpop.eup %2347  ;;  %1878 = vst [vmem:[#allocation2 + $0x50] sm:$0xff] %v1846_v42 }
 0x2c3   :  { %v2350_v33 = vpop.eup %2349  ;;  %v1771_v2 = vmul.f32 %v2348_v55, %v3392_v26  ;;  %v1633_v15 = vpop.xlane.xlu0 %1632 }
 0x2c4   :  { %v1770_v18 = vmul.f32 %v2350_v33, %v3395_v44  ;;  %v1679_v59 = vmul.f32 0.0078125, %v1633_v15  ;;  %v1631_v23 = vpop.xlane.xlu1 %1630 }
 0x2c5   :  { %v1810_v63 = vmul.f32 %v3520_v29, %v1771_v2  ;;  %v1678_v34 = vmul.f32 0.0078125, %v1631_v23 }
 0x2c6   :  { %v1809_v53 = vmul.f32 %v3520_v29, %v1770_v18  ;;  %v1711_v54 = vadd.f32 1e-12, %v1679_v59 }
 0x2c7   :  { %v1849_v3 = vadd.f32 %v3526_v9, %v1810_v63  ;;  %v1710_v60 = vadd.f32 1e-12, %v1678_v34 }
 0x2c8   :  { %v1848_v50 = vadd.f32 %v3526_v9, %v1809_v53  ;;  %2355 = vrsqrt.f32 %v1711_v54 }
 0x2c9   :  { %1881 = vst [vmem:[#allocation2 + $0x68] sm:$0xff] %v1849_v3  ;;  %2357 = vrsqrt.f32 %v1710_v60 }
 0x2ca   :  { %v2352_v26 = vpop.eup %2351  ;;  %1880 = vst [vmem:[#allocation2 + $0x60] sm:$0xff] %v1848_v50 }
 0x2cb   :  { %v2354_v61 = vpop.eup %2353  ;;  %v1773_v44 = vmul.f32 %v2352_v26, %v3402_v41  ;;  %v1637_v25 = vpop.xlane.xlu0 %1636 }
 0x2cc   :  { %v1772_v24 = vmul.f32 %v2354_v61, %v3405_v5  ;;  %v1681_v8 = vmul.f32 0.0078125, %v1637_v25  ;;  %v1635_v46 = vpop.xlane.xlu1 %1634 }
 0x2cd   :  { %v1812_v19 = vmul.f32 %v3520_v29, %v1773_v44  ;;  %v1680_v57 = vmul.f32 0.0078125, %v1635_v46 }
 0x2ce   :  { %v1811_v28 = vmul.f32 %v3520_v29, %v1772_v24  ;;  %v1713_v7 = vadd.f32 1e-12, %v1681_v8 }
 0x2cf   :  { %v1851_v6 = vadd.f32 %v3526_v9, %v1812_v19  ;;  %v1712_v56 = vadd.f32 1e-12, %v1680_v57 }
 0x2d0   :  { %v1850_v21 = vadd.f32 %v3526_v9, %v1811_v28  ;;  %2359 = vrsqrt.f32 %v1713_v7 }
 0x2d1   :  { %1883 = vst [vmem:[#allocation2 + $0x78] sm:$0xff] %v1851_v6  ;;  %2361 = vrsqrt.f32 %v1712_v56 }
 0x2d2   :  { %v2356_v41 = vpop.eup %2355  ;;  %1882 = vst [vmem:[#allocation2 + $0x70] sm:$0xff] %v1850_v21 }
 0x2d3   :  { %v2358_v62 = vpop.eup %2357  ;;  %v1775_v5 = vmul.f32 %v2356_v41, %v3412_v11  ;;  %v1641_v17 = vpop.xlane.xlu0 %1640 }
 0x2d4   :  { %v1774_v13 = vmul.f32 %v2358_v62, %v3415_v51  ;;  %v1683_v4 = vmul.f32 0.0078125, %v1641_v17  ;;  %v1639_v20 = vpop.xlane.xlu1 %1638 }
 0x2d5   :  { %v1814_v39 = vmul.f32 %v3520_v29, %v1775_v5  ;;  %v1682_v10 = vmul.f32 0.0078125, %v1639_v20 }
 0x2d6   :  { %v1813_v48 = vmul.f32 %v3520_v29, %v1774_v13  ;;  %v1715_v22 = vadd.f32 1e-12, %v1683_v4 }
 0x2d7   :  { %v1853_v31 = vadd.f32 %v3526_v9, %v1814_v39  ;;  %v1714_v35 = vadd.f32 1e-12, %v1682_v10 }
 0x2d8   :  { %v1852_v37 = vadd.f32 %v3526_v9, %v1813_v48  ;;  %2363 = vrsqrt.f32 %v1715_v22 }
 0x2d9   :  { %1885 = vst [vmem:[#allocation2 + $0x88] sm:$0xff] %v1853_v31  ;;  %2365 = vrsqrt.f32 %v1714_v35 }
 0x2da   :  { %v2360_v11 = vpop.eup %2359  ;;  %1884 = vst [vmem:[#allocation2 + $0x80] sm:$0xff] %v1852_v37 }
 0x2db   :  { %v2362_v47 = vpop.eup %2361  ;;  %v1777_v51 = vmul.f32 %v2360_v11, %v3422_v14  ;;  %v1645_v42 = vpop.xlane.xlu0 %1644 }
 0x2dc   :  { %v1776_v55 = vmul.f32 %v2362_v47, %v3425_v52  ;;  %v1685_v33 = vmul.f32 0.0078125, %v1645_v42  ;;  %v1643_v2 = vpop.xlane.xlu1 %1642 }
 0x2dd   :  { %v1816_v15 = vmul.f32 %v3520_v29, %v1777_v51  ;;  %v1684_v18 = vmul.f32 0.0078125, %v1643_v2 }
 0x2de   :  { %v1815_v59 = vmul.f32 %v3520_v29, %v1776_v55  ;;  %v1717_v23 = vadd.f32 1e-12, %v1685_v33 }
 0x2df   :  { %v1855_v63 = vadd.f32 %v3526_v9, %v1816_v15  ;;  %v1716_v34 = vadd.f32 1e-12, %v1684_v18 }
 0x2e0   :  { %v1854_v53 = vadd.f32 %v3526_v9, %v1815_v59  ;;  %2367 = vrsqrt.f32 %v1717_v23 }
 0x2e1   :  { %1887 = vst [vmem:[#allocation2 + $0x98] sm:$0xff] %v1855_v63  ;;  %2369 = vrsqrt.f32 %v1716_v34 }
 0x2e2   :  { %v2364_v14 = vpop.eup %2363  ;;  %1886 = vst [vmem:[#allocation2 + $0x90] sm:$0xff] %v1854_v53 }
 0x2e3   :  { %v2366_v54 = vpop.eup %2365  ;;  %v1779_v52 = vmul.f32 %v2364_v14, %v3432_v45  ;;  %v1649_v3 = vpop.xlane.xlu0 %1648 }
 0x2e4   :  { %v1778_v60 = vmul.f32 %v2366_v54, %v3435_v32  ;;  %v1687_v50 = vmul.f32 0.0078125, %v1649_v3  ;;  %v1647_v26 = vpop.xlane.xlu1 %1646 }
 0x2e5   :  { %v1818_v61 = vmul.f32 %v3520_v29, %v1779_v52  ;;  %v1686_v44 = vmul.f32 0.0078125, %v1647_v26 }
 0x2e6   :  { %v1817_v25 = vmul.f32 %v3520_v29, %v1778_v60  ;;  %v1719_v24 = vadd.f32 1e-12, %v1687_v50 }
 0x2e7   :  { %v1857_v8 = vadd.f32 %v3526_v9, %v1818_v61  ;;  %v1718_v46 = vadd.f32 1e-12, %v1686_v44 }
 0x2e8   :  { %v1856_v19 = vadd.f32 %v3526_v9, %v1817_v25  ;;  %2371 = vrsqrt.f32 %v1719_v24 }
 0x2e9   :  { %1889 = vst [vmem:[#allocation2 + $0xa8] sm:$0xff] %v1857_v8  ;;  %2373 = vrsqrt.f32 %v1718_v46 }
 0x2ea   :  { %v2368_v45 = vpop.eup %2367  ;;  %1888 = vst [vmem:[#allocation2 + $0xa0] sm:$0xff] %v1856_v19 }
 0x2eb   :  { %v2370_v57 = vpop.eup %2369  ;;  %v1781_v32 = vmul.f32 %v2368_v45, %v3442_v27  ;;  %v1653_v28 = vpop.xlane.xlu0 %1652 }
 0x2ec   :  { %v1780_v7 = vmul.f32 %v2370_v57, %v3445_v49  ;;  %v1689_v6 = vmul.f32 0.0078125, %v1653_v28  ;;  %v1651_v56 = vpop.xlane.xlu1 %1650 }
 0x2ed   :  { %v1820_v21 = vmul.f32 %v3520_v29, %v1781_v32  ;;  %v1688_v41 = vmul.f32 0.0078125, %v1651_v56 }
 0x2ee   :  { %v1819_v62 = vmul.f32 %v3520_v29, %v1780_v7  ;;  %v1721_v5 = vadd.f32 1e-12, %v1689_v6 }
 0x2ef   :  { %v1859_v17 = vadd.f32 %v3526_v9, %v1820_v21  ;;  %v1720_v13 = vadd.f32 1e-12, %v1688_v41 }
 0x2f0   :  { %v1858_v4 = vadd.f32 %v3526_v9, %v1819_v62  ;;  %2375 = vrsqrt.f32 %v1721_v5 }
 0x2f1   :  { %1891 = vst [vmem:[#allocation2 + $0xb8] sm:$0xff] %v1859_v17  ;;  %2377 = vrsqrt.f32 %v1720_v13 }
 0x2f2   :  { %v2372_v27 = vpop.eup %2371  ;;  %1890 = vst [vmem:[#allocation2 + $0xb0] sm:$0xff] %v1858_v4 }
 0x2f3   :  { %v2374_v20 = vpop.eup %2373  ;;  %v1783_v49 = vmul.f32 %v2372_v27, %v3452_v36  ;;  %v1657_v39 = vpop.xlane.xlu0 %1656 }
 0x2f4   :  { %v1782_v10 = vmul.f32 %v2374_v20, %v3455_v16  ;;  %v1691_v48 = vmul.f32 0.0078125, %v1657_v39  ;;  %v1655_v22 = vpop.xlane.xlu1 %1654 }
 0x2f5   :  { %v1822_v31 = vmul.f32 %v3520_v29, %v1783_v49  ;;  %v1690_v35 = vmul.f32 0.0078125, %v1655_v22 }
 0x2f6   :  { %v1821_v37 = vmul.f32 %v3520_v29, %v1782_v10  ;;  %v1723_v11 = vadd.f32 1e-12, %v1691_v48 }
 0x2f7   :  { %v1861_v47 = vadd.f32 %v3526_v9, %v1822_v31  ;;  %v1722_v51 = vadd.f32 1e-12, %v1690_v35 }
 0x2f8   :  { %v1860_v42 = vadd.f32 %v3526_v9, %v1821_v37  ;;  %2379 = vrsqrt.f32 %v1723_v11 }
 0x2f9   :  { %1893 = vst [vmem:[#allocation2 + $0xc8] sm:$0xff] %v1861_v47  ;;  %2381 = vrsqrt.f32 %v1722_v51  ;;  %v1601_v36 = vpop.xlane.xlu0 %1600 }
 0x2fa   :  { %v2376_v55 = vpop.eup %2375  ;;  %1892 = vst [vmem:[#allocation2 + $0xc0] sm:$0xff] %v1860_v42  ;;  %v1663_v16 = vmul.f32 0.0078125, %v1601_v36  ;;  %v1599_v33 = vpop.xlane.xlu1 %1598 }
 0x2fb   :  { %v2378_v2 = vpop.eup %2377  ;;  %v1785_v15 = vmul.f32 %v2376_v55, %v3462_v38  ;;  %v1662_v18 = vmul.f32 0.0078125, %v1599_v33 }
 0x2fc   :  { %v1784_v59 = vmul.f32 %v2378_v2, %v3465_v58  ;;  %v1695_v23 = vadd.f32 1e-12, %v1663_v16 }
 0x2fd   :  { %v1824_v63 = vmul.f32 %v3520_v29, %v1785_v15  ;;  %v1694_v34 = vadd.f32 1e-12, %v1662_v18 }
 0x2fe   :  { %v1823_v53 = vmul.f32 %v3520_v29, %v1784_v59  ;;  %2383 = vrsqrt.f32 %v1695_v23  ;;  %v1659_v14 = vpop.xlane.xlu1 %1658  ;;  %v1661_v54 = vpop.xlane.xlu0 %1660 }
 0x2ff   :  { %v1863_v52 = vadd.f32 %v3526_v9, %v1824_v63  ;;  %2385 = vrsqrt.f32 %v1694_v34  ;;  %v1692_v3 = vmul.f32 0.0078125, %v1659_v14  ;;  %v1693_v60 = vmul.f32 0.0078125, %v1661_v54 }
 0x300   :  { %v1862_v50 = vadd.f32 %v3526_v9, %v1823_v53 }
 0x301   :  { %1895 = vst [vmem:[#allocation2 + $0xd8] sm:$0xff] %v1863_v52  ;;  %v1724_v38 = vadd.f32 1e-12, %v1692_v3  ;;  %v1725_v26 = vadd.f32 1e-12, %v1693_v60 }
 0x302   :  { %v2380_v58 = vpop.eup %2379  ;;  %1894 = vst [vmem:[#allocation2 + $0xd0] sm:$0xff] %v1862_v50 }
 0x303   :  { %v2382_v61 = vpop.eup %2381  ;;  %v1787_v44 = vmul.f32 %v2380_v58, %v3472_v0  ;;  %2387 = vrsqrt.f32 %v1724_v38 }
 0x304   :  { %v1786_v25 = vmul.f32 %v2382_v61, %v3475_v40  ;;  %2389 = vrsqrt.f32 %v1725_v26 }
 0x305   :  { %v1826_v24 = vmul.f32 %v3520_v29, %v1787_v44 }
 0x306   :  { %v1825_v8 = vmul.f32 %v3520_v29, %v1786_v25 }
 0x307   :  { %v1865_v46 = vadd.f32 %v3526_v9, %v1826_v24 }
 0x308   :  { %v2384_v19 = vpop.eup %2383  ;;  %v1864_v45 = vadd.f32 %v3526_v9, %v1825_v8 }
 0x309   :  { %v2386_v57 = vpop.eup %2385  ;;  %1897 = vst [vmem:[#allocation2 + $0xe8] sm:$0xff] %v1865_v46  ;;  %v1759_v32 = vmul.f32 %v2384_v19, %v3482_v12 }
 0x30a   :  { %1896 = vst [vmem:[#allocation2 + $0xe0] sm:$0xff] %v1864_v45  ;;  %v1758_v0 = vmul.f32 %v2386_v57, %v3485_v43 }
 0x30b   :  { %v1798_v28 = vmul.f32 %v3520_v29, %v1759_v32 }
 0x30c   :  { %v1797_v40 = vmul.f32 %v3520_v29, %v1758_v0 }
 0x30d   :  { %v2388_v7 = vpop.eup %2387  ;;  %v1837_v6 = vadd.f32 %v3526_v9, %v1798_v28 }
 0x30e   :  { %v2390_v56 = vpop.eup %2389  ;;  %v1836_v21 = vadd.f32 %v3526_v9, %v1797_v40  ;;  %v1788_v41 = vmul.f32 %v2388_v7, %v3492_v30 }
 0x30f   :  { %1869 = vst [vmem:[#allocation2 + $0x8] sm:$0xff] %v1837_v6  ;;  %v1789_v62 = vmul.f32 %v2390_v56, %v3495_v1 }
 0x310   :  { %1868 = vst [vmem:[#allocation2] sm:$0xff] %v1836_v21  ;;  %v1827_v12 = vmul.f32 %v3520_v29, %v1788_v41 }
 0x311   :  { %v1828_v43 = vmul.f32 %v3520_v29, %v1789_v62 }
 0x312   :  { %v1866_v5 = vadd.f32 %v3526_v9, %v1827_v12 }
 0x313   :  { %v1867_v17 = vadd.f32 %v3526_v9, %v1828_v43 }
 0x314   :  { %1898 = vst [vmem:[#allocation2 + $0xf0] sm:$0xff] %v1866_v5 }
 0x315   :  { %1899 = vst [vmem:[#allocation2 + $0xf8] sm:$0xff] %v1867_v17 }
 0x316   :  { %2424 = shalt.err (!%p2421_p12)
}
 0x317   :  { %s2425_s19 = scalar_lea.hbm %s3644_s9, 4096 }
 0x318   :  { %p2426_p13 = scmp.ne.s32.totalorder %s3644_s9, %s2425_s19  ;;  %p2429_p0 = scmp.lt.u32.totalorder %s2425_s19, %s3644_s9 }
 0x31a   :  { %p2431_p1 = pnand %p2429_p0, %p2426_p13 }
 0x31c   :  { %2434 = shalt.err (!%p2431_p1)
}
 0x31d   :  { %s2443_s1 = smov 128   ;;  %s2444_s24 = smov 8  }
 0x31e   :  { %1920 = dma.vmem_to_hbm [thread:$0]  %s1915_s8, 4096, %s3644_s9, [#allocation3], %s2443_s1, %s2443_s1, %s2444_s24  }
 0x31f   :  { %2435 = dma.done.wait [#allocation3], 4096  }
 0x320   :  { %2436 = vsyncadd [#allocation3], 4294963200 }
 0x321   :  { %2437 = dma.done.wait [#allocation5], 32  }
 0x322   :  { %2438 = vsyncadd [#allocation5], 4294967264 }
 0x323   :  { %1937 = vsyncpa [#allocation3], 1 }
 0x324   :  { %1938 = vsyncpa [#allocation5], 1 }

</bundles_post_ra>
